<compile_context>
chip_gen: v7x
topology: tpu7x:2x2x1
jax: 0.10.0
libtpu: 0.0.40
codegen_flags: <defaults>
</compile_context>

<pallas_src>
import jax
import jax.numpy as jnp
from jax.experimental import pallas as pl
from jax.experimental.pallas import tpu as pltpu

V_FEATURE_SIZE = 32      # stands in for config.v_feature_size (2048 in real model)
ROI_OUT = 7
SAMPLING_RATIO = 2
MAX_REGIONS = 36         # region_features has 37 slots: [mean, 36 regions]


def _round_up(x, m):
    return ((x + m - 1) // m) * m


def _prep(x, pads, dtype):
    """Pad (only if needed) and cast (only if needed)."""
    if any(p for _, p in pads):
        x = jnp.pad(x, pads)
    if x.dtype != dtype:
        x = x.astype(dtype)
    return x


# ----------------------------------------------------------------------------
# Pallas kernels
# ----------------------------------------------------------------------------
def pallas_matmul(a, b, bias, activation=None, tm=256, tn=1024, tk=2048,
                  vmem_limit_bytes=48 * 1024 * 1024):
    """o = act(a @ b + bias), tiled (i, j, k).

    a: [M, K], b: [K, N], bias: [1, N].  Operands go to the MXU in bf16;
    accumulation happens directly in the resident f32 output block (its block
    index ignores k), bias add + activation run in f32 on the last k step.
    Defaults (tm=256, tn=1024, tk=2048) target the production proj Linear
    (K~100k, N=2048): block footprint ~12 MiB (fits v7x 64 MiB VMEM) and
    N/tn = 2 parallel j blocks for v7x megacore sharding.
    """
    M, K = a.shape
    K2, N = b.shape
    assert K == K2

    tm = min(tm, _round_up(M, 8))
    tn = min(tn, _round_up(N, 128))
    tk = min(tk, _round_up(K, 128))
    Mp, Np, Kp = _round_up(M, tm), _round_up(N, tn), _round_up(K, tk)

    a_p = _prep(a, ((0, Mp - M), (0, Kp - K)), jnp.bfloat16)
    b_p = _prep(b, ((0, Kp - K), (0, Np - N)), jnp.bfloat16)
    bias_p = _prep(bias, ((0, 0), (0, Np - N)), jnp.float32)

    def kernel(a_ref, b_ref, bias_ref, o_ref):
        k = pl.program_id(2)

        @pl.when(k == 0)
        def _():
            o_ref[...] = jnp.zeros_like(o_ref)

        o_ref[...] += jnp.dot(a_ref[...], b_ref[...],
                              preferred_element_type=jnp.float32)

        @pl.when(k == pl.num_programs(2) - 1)
        def _():
            acc = o_ref[...] + bias_ref[...]
            if activation == "relu":
                acc = jnp.maximum(acc, 0.0)
            o_ref[...] = acc

    out = pl.pallas_call(
        kernel,
        out_shape=jax.ShapeDtypeStruct((Mp, Np), jnp.float32),
        grid_spec=pltpu.PrefetchScalarGridSpec(
            num_scalar_prefetch=0,
            grid=(Mp // tm, Np // tn, Kp // tk),
            in_specs=[
                pl.BlockSpec((tm, tk), lambda i, j, k: (i, k)),
                pl.BlockSpec((tk, tn), lambda i, j, k: (k, j)),
                pl.BlockSpec((1, tn), lambda i, j, k: (0, j)),
            ],
            out_specs=pl.BlockSpec((tm, tn), lambda i, j, k: (i, j)),
        ),
        compiler_params=pltpu.CompilerParams(
            dimension_semantics=("parallel", "parallel", "arbitrary"),
            vmem_limit_bytes=vmem_limit_bytes),
    )(a_p, b_p, bias_p)
    return out[:M, :N]


def pallas_batched_matmul(w, f, tm=512, tn=256, out_dtype=jnp.bfloat16):
    """Per-image RoIAlign pooling: out[b] = w[b] @ f[b].

    K = Hf*Wf is small (16 demo / ~625 prod), so there is a single K step:
    no reduction grid axis, no accumulator scratch, no K zero-padding.  The
    dot is done in f32 (roi_align numerics), the result is stored in
    `out_dtype` (bf16) so the downstream proj matmul needs no cast pass.

    TODO(synk): the dense interpolation matrix w has only 4*sr^2 nonzeros per
    row; a scalar-prefetch gather+FMA kernel would avoid streaming the zeros.
    """
    B, M, K = w.shape
    _, K2, N = f.shape
    assert K == K2

    tm = min(tm, _round_up(M, 8))
    tn = min(tn, _round_up(N, 128))
    Mp, Np = _round_up(M, tm), _round_up(N, tn)

    w_p = w if Mp == M else jnp.pad(w, ((0, 0), (0, Mp - M), (0, 0)))
    f_p = f if Np == N else jnp.pad(f, ((0, 0), (0, 0), (0, Np - N)))

    def kernel(w_ref, f_ref, o_ref):
        o_ref[...] = jnp.dot(w_ref[...], f_ref[...],
                             preferred_element_type=jnp.float32
                             ).astype(o_ref.dtype)

    out = pl.pallas_call(
        kernel,
        out_shape=jax.ShapeDtypeStruct((B, Mp, Np), out_dtype),
        grid_spec=pltpu.PrefetchScalarGridSpec(
            num_scalar_prefetch=0,
            grid=(B, Mp // tm, Np // tn),
            in_specs=[
                pl.BlockSpec((None, tm, K), lambda b, i, j: (b, i, 0)),
                pl.BlockSpec((None, K, tn), lambda b, i, j: (b, 0, j)),
            ],
            out_specs=pl.BlockSpec((None, tm, tn), lambda b, i, j: (b, i, j)),
        ),
        compiler_params=pltpu.CompilerParams(
            dimension_semantics=("parallel", "parallel", "parallel")),
    )(w_p, f_p)
    return out[:, :M, :N]


def pallas_assemble_regions(x, nums, bias, td=2048):
    """region_features[b, 1:n+1] = x[b, :n]; [b, 0] = mean of those n rows;
    [b, n+1:] = bias (= proj(0), since proj already ran upstream).

    x: [B, R, C] projected region features (f32), nums: [B] int32 counts,
    bias: [1, C] proj bias.  Returns [B, R+1, C].  Runs after the proj
    reorder, so the slab is only R*C wide per image (tiny); tiled over C.
    """
    B, R, D = x.shape
    td = min(td, _round_up(D, 128))
    Dp = _round_up(D, td)
    x_p = x if Dp == D else jnp.pad(x, ((0, 0), (0, 0), (0, Dp - D)))
    bias_p = _prep(bias, ((0, 0), (0, Dp - D)), jnp.float32)

    def kernel(n_ref, x_ref, bias_ref, o_ref):
        b = pl.program_id(0)
        n = n_ref[b]
        idx = jax.lax.broadcasted_iota(jnp.int32, (R, 1), 0)
        keep = idx < n
        xv = x_ref[...].astype(jnp.float32)
        bv = bias_ref[...]                                   # [1, td]
        rows = jnp.where(keep, xv, bv)                       # empty slots -> proj(0)=bias
        mean = (jnp.sum(jnp.where(keep, xv, 0.0), axis=0, keepdims=True)
                / jnp.maximum(n, 1).astype(jnp.float32))
        # TODO(synk): PyTorch gives NaN for n == 0 (mean of empty); we return bias.
        mean = jnp.where(n > 0, mean, bv)
        o_ref[0:1, :] = mean
        # NOTE: offset-1 store straddles sublane groups, but after the proj
        # reorder this slab is only ~R*C elements — not worth restructuring.
        o_ref[pl.ds(1, R), :] = rows

    out = pl.pallas_call(
        kernel,
        out_shape=jax.ShapeDtypeStruct((B, R + 1, Dp), jnp.float32),
        grid_spec=pltpu.PrefetchScalarGridSpec(
            num_scalar_prefetch=1,
            grid=(B, Dp // td),
            in_specs=[
                pl.BlockSpec((None, R, td), lambda b, d, n: (b, 0, d)),
                pl.BlockSpec((1, td), lambda b, d, n: (0, d)),
            ],
            out_specs=pl.BlockSpec((None, R + 1, td), lambda b, d, n: (b, 0, d)),
        ),
        compiler_params=pltpu.CompilerParams(
            dimension_semantics=("parallel", "parallel")),
    )(nums, x_p, bias_p)
    return out[:, :, :D]


# ----------------------------------------------------------------------------
# JAX glue
# ----------------------------------------------------------------------------
def im2col_nchw(x, kh, kw, stride, pad):
    B, Cin, H, W = x.shape
    xp = jnp.pad(x, ((0, 0), (0, 0), (pad, pad), (pad, pad)))
    Ho = (H + 2 * pad - kh) // stride + 1
    Wo = (W + 2 * pad - kw) // stride + 1
    cols = []
    for i in range(kh):
        for j in range(kw):
            cols.append(xp[:, :, i:i + stride * Ho:stride, j:j + stride * Wo:stride])
    p = jnp.stack(cols, axis=2)                         # [B, Cin, kh*kw, Ho, Wo]
    p = p.reshape(B, Cin * kh * kw, Ho, Wo)
    p = p.transpose(0, 2, 3, 1).reshape(B * Ho * Wo, Cin * kh * kw)
    return p, Ho, Wo


def build_roialign_weights(boxes, spatial_scale, Hf, Wf,
                           out_size=ROI_OUT, sr=SAMPLING_RATIO):
    """torchvision roi_align (aligned=False) as a dense weight matrix
    [R*out*out, Hf*Wf]: pooled = W @ featmap_flat.  Built with a vectorized
    one-hot compare-and-reduce (no XLA scatter, which serializes on TPU)."""
    R = boxes.shape[0]
    x1 = boxes[:, 0] * spatial_scale
    y1 = boxes[:, 1] * spatial_scale
    x2 = boxes[:, 2] * spatial_scale
    y2 = boxes[:, 3] * spatial_scale
    roi_w = jnp.maximum(x2 - x1, 1.0)
    roi_h = jnp.maximum(y2 - y1, 1.0)
    bin_w = roi_w / out_size
    bin_h = roi_h / out_size

    p = jnp.arange(out_size, dtype=jnp.float32)
    s = jnp.arange(sr, dtype=jnp.float32)
    y = (y1[:, None, None] + p[None, :, None] * bin_h[:, None, None]
         + (s[None, None, :] + 0.5) * bin_h[:, None, None] / sr)   # [R, out, sr]
    x = (x1[:, None, None] + p[None, :, None] * bin_w[:, None, None]
         + (s[None, None, :] + 0.5) * bin_w[:, None, None] / sr)   # [R, out, sr]

    full = (R, out_size, out_size, sr, sr)
    yb = jnp.broadcast_to(y[:, :, None, :, None], full)
    xb = jnp.broadcast_to(x[:, None, :, None, :], full)
    valid = ((yb >= -1.0) & (yb <= Hf) & (xb >= -1.0) & (xb <= Wf)).astype(jnp.float32)

    yc = jnp.maximum(yb, 0.0)
    xc = jnp.maximum(xb, 0.0)
    y_low0 = jnp.floor(yc).astype(jnp.int32)
    x_low0 = jnp.floor(xc).astype(jnp.int32)
    y_clamp = y_low0 >= Hf - 1
    x_clamp = x_low0 >= Wf - 1
    y_low = jnp.where(y_clamp, Hf - 1, y_low0)
    y_high = jnp.where(y_clamp, Hf - 1, y_low0 + 1)
    x_low = jnp.where(x_clamp, Wf - 1, x_low0)
    x_high = jnp.where(x_clamp, Wf - 1, x_low0 + 1)
    yc = jnp.where(y_clamp, float(Hf - 1), yc)
    xc = jnp.where(x_clamp, float(Wf - 1), xc)

    ly = yc - y_low.astype(jnp.float32)
    lx = xc - x_low.astype(jnp.float32)
    hy = 1.0 - ly
    hx = 1.0 - lx
    w1, w2, w3, w4 = hy * hx, hy * lx, ly * hx, ly * lx

    scale = valid / float(sr * sr)
    grid_idx = jnp.arange(Hf * Wf, dtype=jnp.int32)
    W = jnp.zeros((R, out_size, out_size, Hf * Wf), jnp.float32)
    for wgt, yi, xi in ((w1, y_low, x_low), (w2, y_low, x_high),
                        (w3, y_high, x_low), (w4, y_high, x_high)):
        flat = yi * Wf + xi                                           # [R,7,7,sr,sr]
        onehot = (flat[..., None] == grid_idx).astype(jnp.float32)    # [...,Hf*Wf]
        W = W + jnp.sum((wgt * scale)[..., None] * onehot, axis=(3, 4))
    # TODO(synk): for production feature maps (~625 cells) replace this dense
    # matrix with a scalar-prefetch gather+FMA Pallas RoIAlign kernel.
    return W.reshape(R * out_size * out_size, Hf * Wf)


# ----------------------------------------------------------------------------
# Forward pass
# ----------------------------------------------------------------------------
def feature_extractor_forward(params, img, regions, image_info):
    B = img.shape[0]

    # --- backbone feature extraction (layer4 of ResNet101 in the original) ---
    # TODO(synk): pretrained torchvision ResNet101 backbone replaced by a single
    # synthetic strided conv + ReLU producing V_FEATURE_SIZE channels.
    patches, Hf, Wf = im2col_nchw(img, 3, 3, stride=8, pad=1)
    feat = pallas_matmul(patches, params["conv_w"], params["conv_b"],
                         activation="relu")                # [B*Hf*Wf, C] f32
    C = feat.shape[-1]
    feat = feat.reshape(B, Hf * Wf, C)

    # --- MultiScaleRoIAlign (single level '0') as dense interpolation matmul ---
    # TODO(synk): spatial_scale derived from max batch height; torchvision
    # infers it per image/feature-map pair (mixed-size batches may differ).
    h_max = jnp.max(image_info[:, 1]).astype(jnp.float32)   # image_shapes = (h, w)
    spatial_scale = 2.0 ** jnp.round(jnp.log2(Hf / h_max))
    wmat = jax.vmap(
        lambda bx: build_roialign_weights(bx, spatial_scale, Hf, Wf))(regions)
    box = pallas_batched_matmul(wmat, feat)                  # [B, R*49, C] bf16
    R = regions.shape[1]
    # Natural (7,7,C)-major flattening; the (C,7,7) permutation required by
    # PyTorch's flatten() is folded into params["proj_w_t"].
    box = box.reshape(B * R, ROI_OUT * ROI_OUT * C)           # [B*R, 49*C]

    # --- self.proj : nn.Linear(C*49 -> C), applied BEFORE assembly ---
    # proj is affine, so it commutes with the slot-0 mean; empty slots get
    # proj(0) = bias, which the assemble kernel writes explicitly.
    proj = pallas_matmul(box, params["proj_w_t"], params["proj_b"])  # [B*R, C] f32
    proj = proj.reshape(B, R, C)

    # --- scatter first n regions into slots 1..n, mean into slot 0 ---
    nums = image_info[:, 2].astype(jnp.int32)
    out = pallas_assemble_regions(proj, nums, params["proj_b"])      # [B, 37, C]
    return out


# ----------------------------------------------------------------------------
if __name__ == "__main__":
    key = jax.random.PRNGKey(0)
    k = jax.random.split(key, 8)
    C = V_FEATURE_SIZE

    conv_w = jax.random.normal(k[0], (C, 3, 3, 3), jnp.float32) * 0.1
    # torch Linear weight is [C, C*49] with input indexed (c, 7, 7)-major.
    proj_w = jax.random.normal(k[2], (C, C * ROI_OUT * ROI_OUT), jnp.float32) * 0.02
    proj_w_t = proj_w.T                                                     # [C*49, C]
    # Fold the (C,7,7)->(7,7,C) flattening permutation into the weight (one-time).
    proj_w_t_perm = (proj_w_t.reshape(C, ROI_OUT * ROI_OUT, C)
                     .transpose(1, 0, 2)
                     .reshape(ROI_OUT * ROI_OUT * C, C))

    params = {
        # Static matmul weights cast to bf16 ONCE at init (no per-call HBM pass).
        "conv_w": conv_w.reshape(C, -1).T.astype(jnp.bfloat16),            # [27, C]
        "conv_b": jax.random.normal(k[1], (1, C), jnp.float32) * 0.1,
        "proj_w_t": proj_w_t_perm.astype(jnp.bfloat16),                    # [49*C, C]
        "proj_b": jax.random.normal(k[3], (1, C), jnp.float32) * 0.02,
    }

    B = 2
    img = jax.random.normal(k[4], (B, 3, 32, 32), jnp.float32)              # NCHW
    xy1 = jax.random.uniform(k[5], (B, MAX_REGIONS, 2), minval=2.0, maxval=24.0)
    wh = jax.random.uniform(k[6], (B, MAX_REGIONS, 2), minval=4.0, maxval=12.0)
    regions = jnp.concatenate([xy1, jnp.minimum(xy1 + wh, 32.0)], axis=-1)  # [B,36,4]
    # image_info rows: (width, height, num_regions)
    image_info = jnp.array([[32, 32, 5], [32, 32, 3]], dtype=jnp.int32)

    fwd = jax.jit(feature_extractor_forward)
    out = fwd(params, img, regions, image_info)
    jax.block_until_ready(out)
    assert out.shape == (B, MAX_REGIONS + 1, C), out.shape
    assert bool(jnp.all(jnp.isfinite(out)))
    print("KERNEL_OK")
</pallas_src>

<mosaic_0001>
module attributes {stable_mosaic.version = 11 : i64} {
  func.func @kernel(%arg0: i32, %arg1: i32, %arg2: i32, %arg3: memref<1x512x16xf32, #tpu.memory_space<vmem>>, %arg4: memref<1x16x128xf32, #tpu.memory_space<vmem>>, %arg5: memref<1x512x128xbf16, #tpu.memory_space<vmem>>) attributes {dimension_semantics = [#tpu.dimension_semantics<parallel>, #tpu.dimension_semantics<parallel>, #tpu.dimension_semantics<parallel>], iteration_bounds = array<i64: 2, 4, 1>, scalar_prefetch = 0 : i64, scratch_operands = 0 : i64, tpu.core_type = #tpu.core_type<tc>, window_params = [{transform_indices = @transform_0, window_bounds = array<i64: 1, 512, 16>}, {transform_indices = @transform_1, window_bounds = array<i64: 1, 16, 128>}, {transform_indices = @transform_2, window_bounds = array<i64: 1, 512, 128>}]} {
    %c0 = arith.constant 0 : index
    %c0_0 = arith.constant 0 : index
    %c0_1 = arith.constant 0 : index
    %0 = vector.load %arg3[%c0, %c0_0, %c0_1] : memref<1x512x16xf32, #tpu.memory_space<vmem>>, vector<1x512x16xf32>
    %1 = vector.shape_cast %0 : vector<1x512x16xf32> to vector<512x16xf32>
    %c0_2 = arith.constant 0 : index
    %c0_3 = arith.constant 0 : index
    %c0_4 = arith.constant 0 : index
    %2 = vector.load %arg4[%c0_2, %c0_3, %c0_4] : memref<1x16x128xf32, #tpu.memory_space<vmem>>, vector<1x16x128xf32>
    %3 = vector.shape_cast %2 : vector<1x16x128xf32> to vector<16x128xf32>
    %cst = arith.constant dense<0.000000e+00> : vector<512x128xf32>
    %4 = tpu.matmul %1, %3, %cst {dimension_numbers = #tpu.dot_dimension_numbers<[1], [0], [0], [1], [0, 0, 1, 1], [], []>} : vector<512x16xf32>, vector<16x128xf32>, vector<512x128xf32> -> vector<512x128xf32>
    %5 = arith.truncf %4 : vector<512x128xf32> to vector<512x128xbf16>
    %c0_5 = arith.constant 0 : index
    %c0_6 = arith.constant 0 : index
    %c0_7 = arith.constant 0 : index
    %6 = vector.load %arg5[%c0_5, %c0_6, %c0_7] : memref<1x512x128xbf16, #tpu.memory_space<vmem>>, vector<1x512x128xbf16>
    %7 = vector.shape_cast %6 : vector<1x512x128xbf16> to vector<512x128xbf16>
    %8 = vector.shape_cast %5 : vector<512x128xbf16> to vector<1x512x128xbf16>
    tpu.vector_store %arg5[%c0_5, %c0_6, %c0_7], %8 {strides = array<i32>} : memref<1x512x128xbf16, #tpu.memory_space<vmem>>, vector<1x512x128xbf16>,
    return
  }
  func.func @transform_0(%arg0: i32, %arg1: i32, %arg2: i32) -> (i32, i32, i32) {
    %c0_i32 = arith.constant 0 : i32
    %c0_i32_0 = arith.constant 0 : i32
    return %arg0, %arg1, %c0_i32 : i32, i32, i32
  }
  func.func @transform_1(%arg0: i32, %arg1: i32, %arg2: i32) -> (i32, i32, i32) {
    %c0_i32 = arith.constant 0 : i32
    %c0_i32_0 = arith.constant 0 : i32
    return %arg0, %c0_i32, %arg2 : i32, i32, i32
  }
  func.func @transform_2(%arg0: i32, %arg1: i32, %arg2: i32) -> (i32, i32, i32) {
    %c0_i32 = arith.constant 0 : i32
    return %arg0, %arg1, %arg2 : i32, i32, i32
  }
}

module attributes {stable_mosaic.version = 11 : i64} {
  func.func @kernel(%arg0: i32, %arg1: i32, %arg2: i32, %arg3: memref<32x128xbf16, #tpu.memory_space<vmem>>, %arg4: memref<128x128xbf16, #tpu.memory_space<vmem>>, %arg5: memref<1x128xf32, #tpu.memory_space<vmem>>, %arg6: memref<32x128xf32, #tpu.memory_space<vmem>>) attributes {dimension_semantics = [#tpu.dimension_semantics<parallel>, #tpu.dimension_semantics<parallel>, #tpu.dimension_semantics<arbitrary>], iteration_bounds = array<i64: 1, 1, 1>, scalar_prefetch = 0 : i64, scratch_operands = 0 : i64, tpu.core_type = #tpu.core_type<tc>, window_params = [{transform_indices = @transform_0, window_bounds = array<i64: 32, 128>}, {transform_indices = @transform_1, window_bounds = array<i64: 128, 128>}, {transform_indices = @transform_2, window_bounds = array<i64: 1, 128>}, {transform_indices = @transform_3, window_bounds = array<i64: 32, 128>}]} {
    %c0_i32 = arith.constant 0 : i32
    %0 = arith.cmpi eq, %arg2, %c0_i32 : i32
    %1 = arith.extui %0 : i1 to i32
    %c0_i32_0 = arith.constant 0 : i32
    %2 = arith.cmpi ne, %1, %c0_i32_0 : i32
    scf.if %2 {
      %cst_10 = arith.constant 0.000000e+00 : f32
      %12 = vector.broadcast %cst_10 : f32 to vector<32x128xf32>
      %c0_11 = arith.constant 0 : index
      %c0_12 = arith.constant 0 : index
      %13 = vector.load %arg6[%c0_11, %c0_12] : memref<32x128xf32, #tpu.memory_space<vmem>>, vector<32x128xf32>
      tpu.vector_store %arg6[%c0_11, %c0_12], %12 {strides = array<i32>} : memref<32x128xf32, #tpu.memory_space<vmem>>, vector<32x128xf32>,
    } else {
    }
    %c0 = arith.constant 0 : index
    %c0_1 = arith.constant 0 : index
    %3 = vector.load %arg6[%c0, %c0_1] : memref<32x128xf32, #tpu.memory_space<vmem>>, vector<32x128xf32>
    %c0_2 = arith.constant 0 : index
    %c0_3 = arith.constant 0 : index
    %4 = vector.load %arg3[%c0_2, %c0_3] : memref<32x128xbf16, #tpu.memory_space<vmem>>, vector<32x128xbf16>
    %c0_4 = arith.constant 0 : index
    %c0_5 = arith.constant 0 : index
    %5 = vector.load %arg4[%c0_4, %c0_5] : memref<128x128xbf16, #tpu.memory_space<vmem>>, vector<128x128xbf16>
    %cst = arith.constant dense<0.000000e+00> : vector<32x128xf32>
    %6 = tpu.matmul %4, %5, %cst {dimension_numbers = #tpu.dot_dimension_numbers<[1], [0], [0], [1], [0, 0, 1, 1], [], []>} : vector<32x128xbf16>, vector<128x128xbf16>, vector<32x128xf32> -> vector<32x128xf32>
    %7 = arith.addf %3, %6 : vector<32x128xf32>
    %c0_6 = arith.constant 0 : index
    %c0_7 = arith.constant 0 : index
    %8 = vector.load %arg6[%c0_6, %c0_7] : memref<32x128xf32, #tpu.memory_space<vmem>>, vector<32x128xf32>
    tpu.vector_store %arg6[%c0_6, %c0_7], %7 {strides = array<i32>} : memref<32x128xf32, #tpu.memory_space<vmem>>, vector<32x128xf32>,
    %c0_i32_8 = arith.constant 0 : i32
    %9 = arith.cmpi eq, %arg2, %c0_i32_8 : i32
    %10 = arith.extui %9 : i1 to i32
    %c0_i32_9 = arith.constant 0 : i32
    %11 = arith.cmpi ne, %10, %c0_i32_9 : i32
    scf.if %11 {
      %c0_10 = arith.constant 0 : index
      %c0_11 = arith.constant 0 : index
      %12 = vector.load %arg6[%c0_10, %c0_11] : memref<32x128xf32, #tpu.memory_space<vmem>>, vector<32x128xf32>
      %c0_12 = arith.constant 0 : index
      %c0_13 = arith.constant 0 : index
      %13 = vector.load %arg5[%c0_12, %c0_13] : memref<1x128xf32, #tpu.memory_space<vmem>>, vector<1x128xf32>
      %14 = vector.broadcast %13 : vector<1x128xf32> to vector<32x128xf32>
      %15 = arith.addf %12, %14 : vector<32x128xf32>
      %cst_14 = arith.constant 0.000000e+00 : f32
      %16 = vector.broadcast %cst_14 : f32 to vector<32x128xf32>
      %17 = arith.maximumf %15, %16 : vector<32x128xf32>
      %c0_15 = arith.constant 0 : index
      %c0_16 = arith.constant 0 : index
      %18 = vector.load %arg6[%c0_15, %c0_16] : memref<32x128xf32, #tpu.memory_space<vmem>>, vector<32x128xf32>
      tpu.vector_store %arg6[%c0_15, %c0_16], %17 {strides = array<i32>} : memref<32x128xf32, #tpu.memory_space<vmem>>, vector<32x128xf32>,
    } else {
    }
    return
  }
  func.func @transform_0(%arg0: i32, %arg1: i32, %arg2: i32) -> (i32, i32) {
    %c0_i32 = arith.constant 0 : i32
    return %arg0, %arg2 : i32, i32
  }
  func.func @transform_1(%arg0: i32, %arg1: i32, %arg2: i32) -> (i32, i32) {
    %c0_i32 = arith.constant 0 : i32
    return %arg2, %arg1 : i32, i32
  }
  func.func @transform_2(%arg0: i32, %arg1: i32, %arg2: i32) -> (i32, i32) {
    %c0_i32 = arith.constant 0 : i32
    %c0_i32_0 = arith.constant 0 : i32
    return %c0_i32, %arg1 : i32, i32
  }
  func.func @transform_3(%arg0: i32, %arg1: i32, %arg2: i32) -> (i32, i32) {
    %c0_i32 = arith.constant 0 : i32
    return %arg0, %arg1 : i32, i32
  }
}

module attributes {stable_mosaic.version = 11 : i64} {
  func.func @kernel(%arg0: i32, %arg1: i32, %arg2: i32, %arg3: memref<72x1664xbf16, #tpu.memory_space<vmem>>, %arg4: memref<1664x128xbf16, #tpu.memory_space<vmem>>, %arg5: memref<1x128xf32, #tpu.memory_space<vmem>>, %arg6: memref<72x128xf32, #tpu.memory_space<vmem>>) attributes {dimension_semantics = [#tpu.dimension_semantics<parallel>, #tpu.dimension_semantics<parallel>, #tpu.dimension_semantics<arbitrary>], iteration_bounds = array<i64: 1, 1, 1>, scalar_prefetch = 0 : i64, scratch_operands = 0 : i64, tpu.core_type = #tpu.core_type<tc>, window_params = [{transform_indices = @transform_0, window_bounds = array<i64: 72, 1664>}, {transform_indices = @transform_1, window_bounds = array<i64: 1664, 128>}, {transform_indices = @transform_2, window_bounds = array<i64: 1, 128>}, {transform_indices = @transform_3, window_bounds = array<i64: 72, 128>}]} {
    %c0_i32 = arith.constant 0 : i32
    %0 = arith.cmpi eq, %arg2, %c0_i32 : i32
    %1 = arith.extui %0 : i1 to i32
    %c0_i32_0 = arith.constant 0 : i32
    %2 = arith.cmpi ne, %1, %c0_i32_0 : i32
    scf.if %2 {
      %cst_10 = arith.constant 0.000000e+00 : f32
      %12 = vector.broadcast %cst_10 : f32 to vector<72x128xf32>
      %c0_11 = arith.constant 0 : index
      %c0_12 = arith.constant 0 : index
      %13 = vector.load %arg6[%c0_11, %c0_12] : memref<72x128xf32, #tpu.memory_space<vmem>>, vector<72x128xf32>
      tpu.vector_store %arg6[%c0_11, %c0_12], %12 {strides = array<i32>} : memref<72x128xf32, #tpu.memory_space<vmem>>, vector<72x128xf32>,
    } else {
    }
    %c0 = arith.constant 0 : index
    %c0_1 = arith.constant 0 : index
    %3 = vector.load %arg6[%c0, %c0_1] : memref<72x128xf32, #tpu.memory_space<vmem>>, vector<72x128xf32>
    %c0_2 = arith.constant 0 : index
    %c0_3 = arith.constant 0 : index
    %4 = vector.load %arg3[%c0_2, %c0_3] : memref<72x1664xbf16, #tpu.memory_space<vmem>>, vector<72x1664xbf16>
    %c0_4 = arith.constant 0 : index
    %c0_5 = arith.constant 0 : index
    %5 = vector.load %arg4[%c0_4, %c0_5] : memref<1664x128xbf16, #tpu.memory_space<vmem>>, vector<1664x128xbf16>
    %cst = arith.constant dense<0.000000e+00> : vector<72x128xf32>
    %6 = tpu.matmul %4, %5, %cst {dimension_numbers = #tpu.dot_dimension_numbers<[1], [0], [0], [1], [0, 0, 1, 1], [], []>} : vector<72x1664xbf16>, vector<1664x128xbf16>, vector<72x128xf32> -> vector<72x128xf32>
    %7 = arith.addf %3, %6 : vector<72x128xf32>
    %c0_6 = arith.constant 0 : index
    %c0_7 = arith.constant 0 : index
    %8 = vector.load %arg6[%c0_6, %c0_7] : memref<72x128xf32, #tpu.memory_space<vmem>>, vector<72x128xf32>
    tpu.vector_store %arg6[%c0_6, %c0_7], %7 {strides = array<i32>} : memref<72x128xf32, #tpu.memory_space<vmem>>, vector<72x128xf32>,
    %c0_i32_8 = arith.constant 0 : i32
    %9 = arith.cmpi eq, %arg2, %c0_i32_8 : i32
    %10 = arith.extui %9 : i1 to i32
    %c0_i32_9 = arith.constant 0 : i32
    %11 = arith.cmpi ne, %10, %c0_i32_9 : i32
    scf.if %11 {
      %c0_10 = arith.constant 0 : index
      %c0_11 = arith.constant 0 : index
      %12 = vector.load %arg6[%c0_10, %c0_11] : memref<72x128xf32, #tpu.memory_space<vmem>>, vector<72x128xf32>
      %c0_12 = arith.constant 0 : index
      %c0_13 = arith.constant 0 : index
      %13 = vector.load %arg5[%c0_12, %c0_13] : memref<1x128xf32, #tpu.memory_space<vmem>>, vector<1x128xf32>
      %14 = vector.broadcast %13 : vector<1x128xf32> to vector<72x128xf32>
      %15 = arith.addf %12, %14 : vector<72x128xf32>
      %c0_14 = arith.constant 0 : index
      %c0_15 = arith.constant 0 : index
      %16 = vector.load %arg6[%c0_14, %c0_15] : memref<72x128xf32, #tpu.memory_space<vmem>>, vector<72x128xf32>
      tpu.vector_store %arg6[%c0_14, %c0_15], %15 {strides = array<i32>} : memref<72x128xf32, #tpu.memory_space<vmem>>, vector<72x128xf32>,
    } else {
    }
    return
  }
  func.func @transform_0(%arg0: i32, %arg1: i32, %arg2: i32) -> (i32, i32) {
    %c0_i32 = arith.constant 0 : i32
    return %arg0, %arg2 : i32, i32
  }
  func.func @transform_1(%arg0: i32, %arg1: i32, %arg2: i32) -> (i32, i32) {
    %c0_i32 = arith.constant 0 : i32
    return %arg2, %arg1 : i32, i32
  }
  func.func @transform_2(%arg0: i32, %arg1: i32, %arg2: i32) -> (i32, i32) {
    %c0_i32 = arith.constant 0 : i32
    %c0_i32_0 = arith.constant 0 : i32
    return %c0_i32, %arg1 : i32, i32
  }
  func.func @transform_3(%arg0: i32, %arg1: i32, %arg2: i32) -> (i32, i32) {
    %c0_i32 = arith.constant 0 : i32
    return %arg0, %arg1 : i32, i32
  }
}

module attributes {stable_mosaic.version = 11 : i64} {
  func.func @kernel(%arg0: i32, %arg1: i32, %arg2: memref<2xi32, #tpu.memory_space<smem>>, %arg3: memref<1x36x128xf32, #tpu.memory_space<vmem>>, %arg4: memref<1x128xf32, #tpu.memory_space<vmem>>, %arg5: memref<1x37x128xf32, #tpu.memory_space<vmem>>) attributes {dimension_semantics = [#tpu.dimension_semantics<parallel>, #tpu.dimension_semantics<parallel>], iteration_bounds = array<i64: 2, 1>, scalar_prefetch = 1 : i64, scratch_operands = 0 : i64, tpu.core_type = #tpu.core_type<tc>, window_params = [{transform_indices = @transform_0, window_bounds = array<i64: 1, 36, 128>}, {transform_indices = @transform_1, window_bounds = array<i64: 1, 128>}, {transform_indices = @transform_2, window_bounds = array<i64: 1, 37, 128>}]} {
    %0 = arith.index_cast %arg0 : i32 to index
    %1 = memref.load %arg2[%0] : memref<2xi32, #tpu.memory_space<smem>>
    %2 = tpu.iota {dimensions = array<i32: 0>} : vector<36x1xi32>
    %3 = vector.broadcast %1 : i32 to vector<36x1xi32>
    %4 = arith.cmpi slt, %2, %3 : vector<36x1xi32>
    %c0 = arith.constant 0 : index
    %c0_0 = arith.constant 0 : index
    %c0_1 = arith.constant 0 : index
    %5 = vector.load %arg3[%c0, %c0_0, %c0_1] : memref<1x36x128xf32, #tpu.memory_space<vmem>>, vector<1x36x128xf32>
    %6 = vector.shape_cast %5 : vector<1x36x128xf32> to vector<36x128xf32>
    %c0_2 = arith.constant 0 : index
    %c0_3 = arith.constant 0 : index
    %7 = vector.load %arg4[%c0_2, %c0_3] : memref<1x128xf32, #tpu.memory_space<vmem>>, vector<1x128xf32>
    %8 = vector.shape_cast %4 : vector<36x1xi1> to vector<36x1xi1>
    %9 = vector.broadcast %8 : vector<36x1xi1> to vector<36x128xi1>
    %10 = vector.shape_cast %7 : vector<1x128xf32> to vector<1x128xf32>
    %11 = vector.broadcast %10 : vector<1x128xf32> to vector<36x128xf32>
    %12 = arith.select %9, %6, %11 : vector<36x128xi1>, vector<36x128xf32>
    %cst = arith.constant 0.000000e+00 : f32
    %13 = vector.shape_cast %4 : vector<36x1xi1> to vector<36x1xi1>
    %14 = vector.broadcast %13 : vector<36x1xi1> to vector<36x128xi1>
    %15 = vector.broadcast %cst : f32 to vector<36x128xf32>
    %16 = arith.select %14, %6, %15 : vector<36x128xi1>, vector<36x128xf32>
    %cst_4 = arith.constant dense<0.000000e+00> : vector<128xf32>
    %17 = vector.multi_reduction <add>, %16, %cst_4 [0] : vector<36x128xf32> to vector<128xf32>
    %18 = vector.shape_cast %17 : vector<128xf32> to vector<1x128xf32>
    %c1_i32 = arith.constant 1 : i32
    %19 = arith.maxsi %1, %c1_i32 : i32
    %20 = arith.sitofp %19 : i32 to f32
    %21 = vector.broadcast %20 : f32 to vector<1x128xf32>
    %22 = arith.divf %18, %21 : vector<1x128xf32>
    %c0_i32 = arith.constant 0 : i32
    %23 = arith.cmpi sgt, %1, %c0_i32 : i32
    %24 = arith.select %23, %22, %7 : vector<1x128xf32>
    %c0_5 = arith.constant 0 : index
    %c0_6 = arith.constant 0 : index
    %c0_7 = arith.constant 0 : index
    %25 = vector.load %arg5[%c0_5, %c0_6, %c0_7] : memref<1x37x128xf32, #tpu.memory_space<vmem>>, vector<1x1x128xf32>
    %26 = vector.shape_cast %25 : vector<1x1x128xf32> to vector<1x128xf32>
    %27 = vector.shape_cast %24 : vector<1x128xf32> to vector<1x1x128xf32>
    tpu.vector_store %arg5[%c0_5, %c0_6, %c0_7], %27 {strides = array<i32>} : memref<1x37x128xf32, #tpu.memory_space<vmem>>, vector<1x1x128xf32>,
    %c0_8 = arith.constant 0 : index
    %c1 = arith.constant 1 : index
    %c0_9 = arith.constant 0 : index
    %28 = vector.load %arg5[%c0_8, %c1, %c0_9] : memref<1x37x128xf32, #tpu.memory_space<vmem>>, vector<1x36x128xf32>
    %29 = vector.shape_cast %28 : vector<1x36x128xf32> to vector<36x128xf32>
    %30 = vector.shape_cast %12 : vector<36x128xf32> to vector<1x36x128xf32>
    tpu.vector_store %arg5[%c0_8, %c1, %c0_9], %30 {strides = array<i32>} : memref<1x37x128xf32, #tpu.memory_space<vmem>>, vector<1x36x128xf32>,
    return
  }
  func.func @transform_0(%arg0: i32, %arg1: i32, %arg2: memref<2xi32, #tpu.memory_space<smem>>) -> (i32, i32, i32) {
    %c0_i32 = arith.constant 0 : i32
    %c0_i32_0 = arith.constant 0 : i32
    return %arg0, %c0_i32, %arg1 : i32, i32, i32
  }
  func.func @transform_1(%arg0: i32, %arg1: i32, %arg2: memref<2xi32, #tpu.memory_space<smem>>) -> (i32, i32) {
    %c0_i32 = arith.constant 0 : i32
    %c0_i32_0 = arith.constant 0 : i32
    return %c0_i32, %arg1 : i32, i32
  }
  func.func @transform_2(%arg0: i32, %arg1: i32, %arg2: memref<2xi32, #tpu.memory_space<smem>>) -> (i32, i32, i32) {
    %c0_i32 = arith.constant 0 : i32
    %c0_i32_0 = arith.constant 0 : i32
    return %arg0, %c0_i32, %arg1 : i32, i32, i32
  }
}

</mosaic_0001>

<bundles_post_ra>
// kernel: feature_extractor_forward.4
= control target key start
LH: loop header
LB: loop body
LE: loop exit
PB: predicated region body
PF: predicated region fallthrough
CT: control target
= control target key end

     0   :  { %s311_s1 = inlined_call_operand.vmem [shape: bf16[128,128], index: 1, kind: input, shape index: {}]   ;;  %s312_s0 = inlined_call_operand.vmem [shape: bf16[32,128], index: 0, kind: input, shape index: {}]   ;;  %s313_s2 = inlined_call_operand.vmem [shape: f32[1,128], index: 2, kind: input, shape index: {}]   ;;  %s314_s3 = inlined_call_operand.vmem [shape: f32[32,128], index: 3, kind: output, shape index: {}]  }
   0x1   :  { %v236_v0 = vld [vmem:[%s311_s1] sm:$0xff]   ;;  %v237_v1 = vld [vmem:[%s311_s1 + $0x8] sm:$0xff]   ;;  %v238_v2 = vld [vmem:[%s311_s1 + $0x10] sm:$0xff]  }
   0x2   :  { %215 = vmatprep.subr.bf16.mxu0 %v236_v0  ;;  %v239_v3 = vld [vmem:[%s311_s1 + $0x18] sm:$0xff]   ;;  %v244_v4 = vld [vmem:[%s312_s0] sm:$0xff]   ;;  %v241_v6 = vld [vmem:[%s311_s1 + $0x28] sm:$0xff]  }
   0x3   :  { %216 = vmatpush3.bf16.msra.mxu0 %v236_v0  ;;  %231 = vmatprep.mubr.bf16.mxu0 %v244_v4  ;;  %v240_v5 = vld [vmem:[%s311_s1 + $0x20] sm:$0xff]   ;;  %v242_v7 = vld [vmem:[%s311_s1 + $0x30] sm:$0xff]   ;;  %v243_v8 = vld [vmem:[%s311_s1 + $0x38] sm:$0xff]  }
   0x4   :  { %217 = vmatprep.subr.bf16.mxu0 %v237_v1  ;;  %v245_v9 = vld [vmem:[%s312_s0 + $0x8] sm:$0xff]   ;;  %v204_v11 = vld [vmem:[%s313_s2] ss:$0 sm:$0xff] }
   0x7   :  { %218 = vmatpush3.bf16.msra.mxu0 %v237_v1 }
   0x8   :  { %219 = vmatprep.subr.bf16.mxu0 %v238_v2 }
   0xb   :  { %220 = vmatpush3.bf16.msra.mxu0 %v238_v2 }
   0xc   :  { %221 = vmatprep.subr.bf16.mxu0 %v239_v3 }
   0xf   :  { %222 = vmatpush3.bf16.msra.mxu0 %v239_v3 }
  0x10   :  { %223 = vmatprep.subr.bf16.mxu0 %v240_v5 }
  0x13   :  { %224 = vmatpush3.bf16.msra.mxu0 %v240_v5 }
  0x14   :  { %225 = vmatprep.subr.bf16.mxu0 %v241_v6 }
  0x17   :  { %226 = vmatpush3.bf16.msra.mxu0 %v241_v6 }
  0x18   :  { %227 = vmatprep.subr.bf16.mxu0 %v242_v7 }
  0x1b   :  { %228 = vmatpush3.bf16.msra.mxu0 %v242_v7 }
  0x1c   :  { %229 = vmatprep.subr.bf16.mxu0 %v243_v8 }
  0x1f   :  { %230 = vmatpush3.bf16.msra.mxu0 %v243_v8 }
  0x22   :  { %232 = vmatmul.mubr.bf16.vlgmr.msra.gmra.mrb[0].mxu0 %v245_v9 }
  0xf5   :  { %v233_v10 = vpop.f32.mrb[0].mxu0 }
  0xf6   :  { %v141_v12 = vpop.f32.mrb[1].mxu0  ;;  %v180_v14 = vadd.f32 %v233_v10, %v204_v11 }
  0xf7   :  { %v234_v13 = vpop.f32.mrb[2].mxu0  ;;  %v178_v16 = vadd.f32 %v204_v11, %v141_v12 }
  0xf8   :  { %v144_v15 = vpop.f32.mrb[3].mxu0  ;;  %v184_v17 = vmax.f32 %v180_v14, 0.0  ;;  %v181_v18 = vadd.f32 %v234_v13, %v204_v11 }
  0xf9   :  { %v182_v19 = vmax.f32 %v178_v16, 0.0  ;;  %v179_v20 = vadd.f32 %v204_v11, %v144_v15 }
  0xfa   :  { %188 = vst [vmem:[%s314_s3 + $0x10] sm:$0xff] %v184_v17  ;;  %v185_v21 = vmax.f32 %v181_v18, 0.0 }
  0xfb   :  { %186 = vst [vmem:[%s314_s3] sm:$0xff] %v182_v19  ;;  %v183_v22 = vmax.f32 %v179_v20, 0.0 }
  0xfc   :  { %189 = vst [vmem:[%s314_s3 + $0x18] sm:$0xff] %v185_v21 }
  0xfd   :  { %187 = vst [vmem:[%s314_s3 + $0x8] sm:$0xff] %v183_v22 }

// kernel: feature_extractor_forward.5
= control target key start
LH: loop header
LB: loop body
LE: loop exit
PB: predicated region body
PF: predicated region fallthrough
CT: control target
= control target key end

     0   :  { %s1980_s9 = smov 0   ;;  %s1982_s10 = smov 0   ;;  %s2202_s0 = inlined_call_operand.vmem [shape: f32[2,2048,16], index: 0, kind: input, shape index: {}]   ;;  %s2203_s1 = inlined_call_operand.vmem [shape: f32[2,16,128], index: 1, kind: input, shape index: {}]   ;;  %s2204_s2 = inlined_call_operand.vmem [shape: bf16[2,2048,128], index: 2, kind: output, shape index: {}]  }
   0x1   :  { %s1984_s11 = smov 0   ;;  %s1986_s12 = smov 0  }
   0x2   :  { %s1988_s13 = smov 0  }
   0x3 LB: > { %s27_s14 = sadd.s32 1, %s1955_s11  ;;  %s31_s15 = sadd.s32 1, %s1959_s12  ;;  %s1963_s13 = sphi %s1988_s13, %s12_s13   ;;  %s1959_s12 = sphi %s1986_s12, %s2208_s12   ;;  %s1955_s11 = sphi %s1984_s11, %s2207_s11   ;;  %s1951_s10 = sphi %s1982_s10, %s2206_s10   ;;  %s1947_s9 = sphi %s1980_s9, %s2205_s9  }
   0x4   : > { %p29_p0 = scmp.ge.s32.totalorder %s27_s14, 4  ;;  %p1318_p1 = scmp.ge.s32.totalorder %s1963_s13, 1 }
   0x5   : > { %p157_p2 = scmp.lt.s32.totalorder %s1963_s13, 9 }
   0x6   : > { %s2210_s14 = smov (%p29_p0, %s27_s14), 0  ;;  %s2212_s15 = smov (!%p29_p0, %s31_s15), %s1959_s12 }
   0x7   : > { %p158_p3 = pnand %p1318_p1, %p157_p2  ;;  %p33_p4 = scmp.ge.s32.totalorder %s2212_s15, 2 }
   0x8   : > { %s1319_s16 = sshll.u32 (!%p158_p3), %s1947_s9, 6  ;;  %p199_p5 = scmp.lt.s32.totalorder (!%p158_p3), %s1951_s10, 1  ;;  %vm295_vm0 = vcmask (!%p158_p3), 130048  }
   0x9   : > { %s2214_s15 = smov (%p33_p4, %s2212_s15), 0  ;;  %161 = sbr.rel (%p158_p3) target bundleno = 302 (0x12e), region = 28 }
   0xa   : > { %p201_p6 = scmp.lt.s32.totalorder (!%p158_p3), %s1319_s16, 255 }
  0x10   : > { %s2216_s10 = smov (!%p199_p5, %s1951_s10), 1  ;;  %s2218_s16 = smov (!%p201_p6, %s1319_s16), 255 }
  0x11   : > { %s1320_s17 = sshll.u32 %s2216_s10, 8  ;;  %s1457_s18 = sshll.u32 %s2216_s10, 4 }
  0x12   : > { %s2010_s19 = sadd.s32 %s1320_s17, %s2218_s16  ;;  %s215_s22 = scalar_lea.vmem %s2203_s1, %s1457_s18 }
  0x13   : > { %s1321_s23 = sshll.u32 %s2010_s19, 3  ;;  %v293_v0 = vld [vmem:[%s215_s22] sm:$0xff]  ;;  %v294_v1 = vld [vmem:[%s215_s22 + $0x8] sm:$0xff]  ;;  %s1326_s27 = sshll.u32 %s2010_s19, 2 }
  0x14   : > { %s2019_s26 = scalar_lea.vmem %s2202_s0, %s1321_s23  ;;  %v1879_v2 = vpack.c.bf16 %v294_v1, %v293_v0  ;;  %s2153_s30 = scalar_lea.vmem %s2204_s2, %s1326_s27 }
  0x15   : > { %v229_v3 = vld [vmem:[%s2019_s26] sm:$0xff]  ;;  %v230_v5 = vld [vmem:[%s2019_s26 + $0x8] sm:$0xff]  ;;  %v231_v7 = vld [vmem:[%s2019_s26 + $0x10] sm:$0xff] }
  0x16   : > { %v261_v4 = vld [vmem:[%s2019_s26 + $0x100] sm:$0xff]  ;;  %1880 = vmatprep.subr.bf16.mxu0 %v1879_v2  ;;  %1883 = vmatprep.subr.bf16.mxu1 %v1879_v2  ;;  %v262_v6 = vld [vmem:[%s2019_s26 + $0x108] sm:$0xff]  ;;  %v263_v8 = vld [vmem:[%s2019_s26 + $0x110] sm:$0xff] }
  0x17   : > { %1882 = vmatpush3.bf16.msra.mxu0 %v1879_v2  ;;  %1884 = vmatpush3.bf16.msra.mxu1 %v1879_v2  ;;  %v232_v9 = vld [vmem:[%s2019_s26 + $0x18] sm:$0xff]  ;;  %v233_v11 = vld [vmem:[%s2019_s26 + $0x20] sm:$0xff]  ;;  %v234_v13 = vld [vmem:[%s2019_s26 + $0x28] sm:$0xff] }
  0x18   : > { %1783 = vmatprep.mubr.msk.f32.mxu0 %vm295_vm0, %v229_v3  ;;  %1831 = vmatprep.mubr.msk.f32.mxu1 %vm295_vm0, %v261_v4  ;;  %v264_v10 = vld [vmem:[%s2019_s26 + $0x118] sm:$0xff]  ;;  %v265_v12 = vld [vmem:[%s2019_s26 + $0x120] sm:$0xff]  ;;  %v266_v14 = vld [vmem:[%s2019_s26 + $0x128] sm:$0xff] }
  0x19   : > { %v235_v15 = vld [vmem:[%s2019_s26 + $0x30] sm:$0xff]  ;;  %v236_v17 = vld [vmem:[%s2019_s26 + $0x38] sm:$0xff]  ;;  %v237_v19 = vld [vmem:[%s2019_s26 + $0x40] sm:$0xff] }
  0x1a   : > { %1784 = vmatmul.mubr.msk.f32.vlgmr.msra.gmra.mrb[0].mxu0 %vm295_vm0, %v230_v5  ;;  %1832 = vmatmul.mubr.msk.f32.vlgmr.msra.gmra.mrb[0].mxu1 %vm295_vm0, %v262_v6  ;;  %v267_v16 = vld [vmem:[%s2019_s26 + $0x130] sm:$0xff]  ;;  %v268_v18 = vld [vmem:[%s2019_s26 + $0x138] sm:$0xff]  ;;  %v269_v20 = vld [vmem:[%s2019_s26 + $0x140] sm:$0xff] }
  0x1b   : > { %1786 = vmatprep.mubr.msk.f32.mxu0 %vm295_vm0, %v231_v7  ;;  %1834 = vmatprep.mubr.msk.f32.mxu1 %vm295_vm0, %v263_v8  ;;  %v238_v21 = vld [vmem:[%s2019_s26 + $0x48] sm:$0xff]  ;;  %v239_v23 = vld [vmem:[%s2019_s26 + $0x50] sm:$0xff]  ;;  %v240_v25 = vld [vmem:[%s2019_s26 + $0x58] sm:$0xff] }
  0x1c   : > { %v270_v22 = vld [vmem:[%s2019_s26 + $0x148] sm:$0xff]  ;;  %v271_v24 = vld [vmem:[%s2019_s26 + $0x150] sm:$0xff]  ;;  %v272_v26 = vld [vmem:[%s2019_s26 + $0x158] sm:$0xff] }
  0x1d   : > { %v241_v27 = vld [vmem:[%s2019_s26 + $0x60] sm:$0xff]  ;;  %v242_v29 = vld [vmem:[%s2019_s26 + $0x68] sm:$0xff]  ;;  %v243_v31 = vld [vmem:[%s2019_s26 + $0x70] sm:$0xff] }
  0x1e   : > { %1787 = vmatmul.mubr.msk.f32.gmra.mrb[2].mxu0 %vm295_vm0, %v232_v9  ;;  %1835 = vmatmul.mubr.msk.f32.gmra.mrb[2].mxu1 %vm295_vm0, %v264_v10  ;;  %v273_v28 = vld [vmem:[%s2019_s26 + $0x160] sm:$0xff]  ;;  %v274_v30 = vld [vmem:[%s2019_s26 + $0x168] sm:$0xff]  ;;  %v275_v32 = vld [vmem:[%s2019_s26 + $0x170] sm:$0xff] }
  0x1f   : > { %1789 = vmatprep.mubr.msk.f32.mxu0 %vm295_vm0, %v233_v11  ;;  %1837 = vmatprep.mubr.msk.f32.mxu1 %vm295_vm0, %v265_v12  ;;  %v244_v33 = vld [vmem:[%s2019_s26 + $0x78] sm:$0xff]  ;;  %v245_v35 = vld [vmem:[%s2019_s26 + $0x80] sm:$0xff]  ;;  %v246_v37 = vld [vmem:[%s2019_s26 + $0x88] sm:$0xff] }
  0x20   : > { %v276_v34 = vld [vmem:[%s2019_s26 + $0x178] sm:$0xff]  ;;  %v277_v36 = vld [vmem:[%s2019_s26 + $0x180] sm:$0xff]  ;;  %v278_v38 = vld [vmem:[%s2019_s26 + $0x188] sm:$0xff] }
  0x21   : > { %v247_v39 = vld [vmem:[%s2019_s26 + $0x90] sm:$0xff]  ;;  %v248_v41 = vld [vmem:[%s2019_s26 + $0x98] sm:$0xff]  ;;  %v249_v43 = vld [vmem:[%s2019_s26 + $0xa0] sm:$0xff] }
  0x22   : > { %1790 = vmatmul.mubr.msk.f32.gmra.mrb[4].mxu0 %vm295_vm0, %v234_v13  ;;  %1838 = vmatmul.mubr.msk.f32.gmra.mrb[4].mxu1 %vm295_vm0, %v266_v14  ;;  %v279_v40 = vld [vmem:[%s2019_s26 + $0x190] sm:$0xff]  ;;  %v280_v42 = vld [vmem:[%s2019_s26 + $0x198] sm:$0xff]  ;;  %v281_v44 = vld [vmem:[%s2019_s26 + $0x1a0] sm:$0xff] }
  0x23   : > { %1792 = vmatprep.mubr.msk.f32.mxu0 %vm295_vm0, %v235_v15  ;;  %1840 = vmatprep.mubr.msk.f32.mxu1 %vm295_vm0, %v267_v16  ;;  %v250_v45 = vld [vmem:[%s2019_s26 + $0xa8] sm:$0xff]  ;;  %v251_v47 = vld [vmem:[%s2019_s26 + $0xb0] sm:$0xff]  ;;  %v252_v49 = vld [vmem:[%s2019_s26 + $0xb8] sm:$0xff] }
  0x24   : > { %v282_v46 = vld [vmem:[%s2019_s26 + $0x1a8] sm:$0xff]  ;;  %v283_v48 = vld [vmem:[%s2019_s26 + $0x1b0] sm:$0xff]  ;;  %v284_v50 = vld [vmem:[%s2019_s26 + $0x1b8] sm:$0xff] }
  0x25   : > { %v253_v51 = vld [vmem:[%s2019_s26 + $0xc0] sm:$0xff]  ;;  %v254_v53 = vld [vmem:[%s2019_s26 + $0xc8] sm:$0xff]  ;;  %v255_v55 = vld [vmem:[%s2019_s26 + $0xd0] sm:$0xff] }
  0x26   : > { %1793 = vmatmul.mubr.msk.f32.gmra.mrb[6].mxu0 %vm295_vm0, %v236_v17  ;;  %1841 = vmatmul.mubr.msk.f32.gmra.mrb[6].mxu1 %vm295_vm0, %v268_v18  ;;  %v285_v52 = vld [vmem:[%s2019_s26 + $0x1c0] sm:$0xff]  ;;  %v286_v54 = vld [vmem:[%s2019_s26 + $0x1c8] sm:$0xff]  ;;  %v287_v56 = vld [vmem:[%s2019_s26 + $0x1d0] sm:$0xff] }
  0x27   : > { %1795 = vmatprep.mubr.msk.f32.mxu0 %vm295_vm0, %v237_v19  ;;  %1843 = vmatprep.mubr.msk.f32.mxu1 %vm295_vm0, %v269_v20  ;;  %v256_v57 = vld [vmem:[%s2019_s26 + $0xd8] sm:$0xff]  ;;  %v257_v59 = vld [vmem:[%s2019_s26 + $0xe0] sm:$0xff]  ;;  %v258_v61 = vld [vmem:[%s2019_s26 + $0xe8] sm:$0xff] }
  0x28   : > { %v288_v58 = vld [vmem:[%s2019_s26 + $0x1d8] sm:$0xff]  ;;  %v289_v60 = vld [vmem:[%s2019_s26 + $0x1e0] sm:$0xff]  ;;  %v290_v62 = vld [vmem:[%s2019_s26 + $0x1e8] sm:$0xff] }
  0x29   : > { %v259_v63 = vld [vmem:[%s2019_s26 + $0xf0] sm:$0xff]  ;;  %v260_v1 = vld [vmem:[%s2019_s26 + $0xf8] sm:$0xff] }
  0x2a   : > { %1796 = vmatmul.mubr.msk.f32.gmra.mrb[8].mxu0 %vm295_vm0, %v238_v21  ;;  %1844 = vmatmul.mubr.msk.f32.gmra.mrb[8].mxu1 %vm295_vm0, %v270_v22  ;;  %v291_v0 = vld [vmem:[%s2019_s26 + $0x1f0] sm:$0xff]  ;;  %v292_v2 = vld [vmem:[%s2019_s26 + $0x1f8] sm:$0xff] }
  0x2b   : > { %1798 = vmatprep.mubr.msk.f32.mxu0 %vm295_vm0, %v239_v23  ;;  %1846 = vmatprep.mubr.msk.f32.mxu1 %vm295_vm0, %v271_v24 }
  0x2e   : > { %1799 = vmatmul.mubr.msk.f32.gmra.mrb[10].mxu0 %vm295_vm0, %v240_v25  ;;  %1847 = vmatmul.mubr.msk.f32.gmra.mrb[10].mxu1 %vm295_vm0, %v272_v26 }
  0x2f   : > { %1801 = vmatprep.mubr.msk.f32.mxu0 %vm295_vm0, %v241_v27  ;;  %1849 = vmatprep.mubr.msk.f32.mxu1 %vm295_vm0, %v273_v28 }
  0x32   : > { %1802 = vmatmul.mubr.msk.f32.gmra.mrb[12].mxu0 %vm295_vm0, %v242_v29  ;;  %1850 = vmatmul.mubr.msk.f32.gmra.mrb[12].mxu1 %vm295_vm0, %v274_v30 }
  0x33   : > { %1804 = vmatprep.mubr.msk.f32.mxu0 %vm295_vm0, %v243_v31  ;;  %1852 = vmatprep.mubr.msk.f32.mxu1 %vm295_vm0, %v275_v32 }
  0x36   : > { %1805 = vmatmul.mubr.msk.f32.gmra.mrb[14].mxu0 %vm295_vm0, %v244_v33  ;;  %1853 = vmatmul.mubr.msk.f32.gmra.mrb[14].mxu1 %vm295_vm0, %v276_v34 }
  0x37   : > { %1807 = vmatprep.mubr.msk.f32.mxu0 %vm295_vm0, %v245_v35  ;;  %1855 = vmatprep.mubr.msk.f32.mxu1 %vm295_vm0, %v277_v36 }
  0x3a   : > { %1808 = vmatmul.mubr.msk.f32.gmra.mrb[16].mxu0 %vm295_vm0, %v246_v37  ;;  %1856 = vmatmul.mubr.msk.f32.gmra.mrb[16].mxu1 %vm295_vm0, %v278_v38 }
  0x3b   : > { %1810 = vmatprep.mubr.msk.f32.mxu0 %vm295_vm0, %v247_v39  ;;  %1858 = vmatprep.mubr.msk.f32.mxu1 %vm295_vm0, %v279_v40 }
  0x3e   : > { %1811 = vmatmul.mubr.msk.f32.gmra.mrb[18].mxu0 %vm295_vm0, %v248_v41  ;;  %1859 = vmatmul.mubr.msk.f32.gmra.mrb[18].mxu1 %vm295_vm0, %v280_v42 }
  0x3f   : > { %1813 = vmatprep.mubr.msk.f32.mxu0 %vm295_vm0, %v249_v43  ;;  %1861 = vmatprep.mubr.msk.f32.mxu1 %vm295_vm0, %v281_v44 }
  0x42   : > { %1814 = vmatmul.mubr.msk.f32.gmra.mrb[20].mxu0 %vm295_vm0, %v250_v45  ;;  %1862 = vmatmul.mubr.msk.f32.gmra.mrb[20].mxu1 %vm295_vm0, %v282_v46 }
  0x43   : > { %1816 = vmatprep.mubr.msk.f32.mxu0 %vm295_vm0, %v251_v47  ;;  %1864 = vmatprep.mubr.msk.f32.mxu1 %vm295_vm0, %v283_v48 }
  0x46   : > { %1817 = vmatmul.mubr.msk.f32.gmra.mrb[22].mxu0 %vm295_vm0, %v252_v49  ;;  %1865 = vmatmul.mubr.msk.f32.gmra.mrb[22].mxu1 %vm295_vm0, %v284_v50 }
  0x47   : > { %1819 = vmatprep.mubr.msk.f32.mxu0 %vm295_vm0, %v253_v51  ;;  %1867 = vmatprep.mubr.msk.f32.mxu1 %vm295_vm0, %v285_v52 }
  0x4a   : > { %1820 = vmatmul.mubr.msk.f32.gmra.mrb[24].mxu0 %vm295_vm0, %v254_v53  ;;  %1868 = vmatmul.mubr.msk.f32.gmra.mrb[24].mxu1 %vm295_vm0, %v286_v54 }
  0x4b   : > { %1822 = vmatprep.mubr.msk.f32.mxu0 %vm295_vm0, %v255_v55  ;;  %1870 = vmatprep.mubr.msk.f32.mxu1 %vm295_vm0, %v287_v56 }
  0x4e   : > { %1823 = vmatmul.mubr.msk.f32.gmra.mrb[26].mxu0 %vm295_vm0, %v256_v57  ;;  %1871 = vmatmul.mubr.msk.f32.gmra.mrb[26].mxu1 %vm295_vm0, %v288_v58 }
  0x4f   : > { %1825 = vmatprep.mubr.msk.f32.mxu0 %vm295_vm0, %v257_v59  ;;  %1873 = vmatprep.mubr.msk.f32.mxu1 %vm295_vm0, %v289_v60 }
  0x52   : > { %1826 = vmatmul.mubr.msk.f32.gmra.mrb[28].mxu0 %vm295_vm0, %v258_v61  ;;  %1874 = vmatmul.mubr.msk.f32.gmra.mrb[28].mxu1 %vm295_vm0, %v290_v62 }
  0x53   : > { %1828 = vmatprep.mubr.msk.f32.mxu0 %vm295_vm0, %v259_v63  ;;  %1876 = vmatprep.mubr.msk.f32.mxu1 %vm295_vm0, %v291_v0 }
  0x56   : > { %1829 = vmatmul.mubr.msk.f32.gmra.mrb[30].mxu0 %vm295_vm0, %v260_v1  ;;  %1877 = vmatmul.mubr.msk.f32.gmra.mrb[30].mxu1 %vm295_vm0, %v292_v2 }
  0xed   : > { %v1785_v3 = vpop.f32.mrb[0].mxu0  ;;  %v1833_v4 = vpop.f32.mrb[0].mxu1 }
  0xee   : > { %v554_v5 = vpop.f32.mrb[1].mxu0  ;;  %v714_v6 = vpop.f32.mrb[1].mxu1 }
  0xef   : > { %v1525_v7 = vpack.c.bf16 %v1785_v3, %v554_v5  ;;  %v1605_v8 = vpack.c.bf16 %v1833_v4, %v714_v6 }
  0xf1   : > { %1526 = vst [vmem:[%s2153_s30] sm:$0xff] %v1525_v7   ;;  %1697 = vst [vmem:[%s2153_s30 + $0x80] sm:$0xff] %v1605_v8   ;;  %v1788_v9 = vpop.f32.mrb[2].mxu0  ;;  %v1836_v10 = vpop.f32.mrb[2].mxu1 }
  0xf2   : > { %v564_v11 = vpop.f32.mrb[3].mxu0  ;;  %v724_v12 = vpop.f32.mrb[3].mxu1 }
  0xf3   : > { %v1530_v13 = vpack.c.bf16 %v1788_v9, %v564_v11  ;;  %v1610_v14 = vpack.c.bf16 %v1836_v10, %v724_v12 }
  0xf5   : > { %1682 = vst [vmem:[%s2153_s30 + $0x8] sm:$0xff] %v1530_v13   ;;  %1698 = vst [vmem:[%s2153_s30 + $0x88] sm:$0xff] %v1610_v14   ;;  %v1791_v15 = vpop.f32.mrb[4].mxu0  ;;  %v1839_v16 = vpop.f32.mrb[4].mxu1 }
  0xf6   : > { %v574_v17 = vpop.f32.mrb[5].mxu0  ;;  %v734_v18 = vpop.f32.mrb[5].mxu1 }
  0xf7   : > { %v1535_v19 = vpack.c.bf16 %v1791_v15, %v574_v17  ;;  %v1615_v20 = vpack.c.bf16 %v1839_v16, %v734_v18 }
  0xf9   : > { %1683 = vst [vmem:[%s2153_s30 + $0x10] sm:$0xff] %v1535_v19   ;;  %1699 = vst [vmem:[%s2153_s30 + $0x90] sm:$0xff] %v1615_v20   ;;  %v1794_v21 = vpop.f32.mrb[6].mxu0  ;;  %v1842_v22 = vpop.f32.mrb[6].mxu1 }
  0xfa   : > { %v584_v23 = vpop.f32.mrb[7].mxu0  ;;  %v744_v24 = vpop.f32.mrb[7].mxu1 }
  0xfb   : > { %v1540_v25 = vpack.c.bf16 %v1794_v21, %v584_v23  ;;  %v1620_v26 = vpack.c.bf16 %v1842_v22, %v744_v24 }
  0xfd   : > { %1684 = vst [vmem:[%s2153_s30 + $0x18] sm:$0xff] %v1540_v25   ;;  %1700 = vst [vmem:[%s2153_s30 + $0x98] sm:$0xff] %v1620_v26   ;;  %v1797_v27 = vpop.f32.mrb[8].mxu0  ;;  %v1845_v28 = vpop.f32.mrb[8].mxu1 }
  0xfe   : > { %v594_v29 = vpop.f32.mrb[9].mxu0  ;;  %v754_v30 = vpop.f32.mrb[9].mxu1 }
  0xff   : > { %v1545_v31 = vpack.c.bf16 %v1797_v27, %v594_v29  ;;  %v1625_v32 = vpack.c.bf16 %v1845_v28, %v754_v30 }
 0x101   : > { %1685 = vst [vmem:[%s2153_s30 + $0x20] sm:$0xff] %v1545_v31   ;;  %1701 = vst [vmem:[%s2153_s30 + $0xa0] sm:$0xff] %v1625_v32   ;;  %v1800_v33 = vpop.f32.mrb[10].mxu0  ;;  %v1848_v34 = vpop.f32.mrb[10].mxu1 }
 0x102   : > { %v604_v35 = vpop.f32.mrb[11].mxu0  ;;  %v764_v36 = vpop.f32.mrb[11].mxu1 }
 0x103   : > { %v1550_v37 = vpack.c.bf16 %v1800_v33, %v604_v35  ;;  %v1630_v38 = vpack.c.bf16 %v1848_v34, %v764_v36 }
 0x105   : > { %1686 = vst [vmem:[%s2153_s30 + $0x28] sm:$0xff] %v1550_v37   ;;  %1702 = vst [vmem:[%s2153_s30 + $0xa8] sm:$0xff] %v1630_v38   ;;  %v1803_v39 = vpop.f32.mrb[12].mxu0  ;;  %v1851_v40 = vpop.f32.mrb[12].mxu1 }
 0x106   : > { %v614_v41 = vpop.f32.mrb[13].mxu0  ;;  %v774_v42 = vpop.f32.mrb[13].mxu1 }
 0x107   : > { %v1555_v43 = vpack.c.bf16 %v1803_v39, %v614_v41  ;;  %v1635_v44 = vpack.c.bf16 %v1851_v40, %v774_v42 }
 0x109   : > { %1687 = vst [vmem:[%s2153_s30 + $0x30] sm:$0xff] %v1555_v43   ;;  %1703 = vst [vmem:[%s2153_s30 + $0xb0] sm:$0xff] %v1635_v44   ;;  %v1806_v45 = vpop.f32.mrb[14].mxu0  ;;  %v1854_v46 = vpop.f32.mrb[14].mxu1 }
 0x10a   : > { %v624_v47 = vpop.f32.mrb[15].mxu0  ;;  %v784_v48 = vpop.f32.mrb[15].mxu1 }
 0x10b   : > { %v1560_v49 = vpack.c.bf16 %v1806_v45, %v624_v47  ;;  %v1640_v50 = vpack.c.bf16 %v1854_v46, %v784_v48 }
 0x10d   : > { %1688 = vst [vmem:[%s2153_s30 + $0x38] sm:$0xff] %v1560_v49   ;;  %1704 = vst [vmem:[%s2153_s30 + $0xb8] sm:$0xff] %v1640_v50   ;;  %v1809_v51 = vpop.f32.mrb[16].mxu0  ;;  %v1857_v52 = vpop.f32.mrb[16].mxu1 }
 0x10e   : > { %v634_v53 = vpop.f32.mrb[17].mxu0  ;;  %v794_v54 = vpop.f32.mrb[17].mxu1 }
 0x10f   : > { %v1565_v55 = vpack.c.bf16 %v1809_v51, %v634_v53  ;;  %v1645_v56 = vpack.c.bf16 %v1857_v52, %v794_v54 }
 0x111   : > { %1689 = vst [vmem:[%s2153_s30 + $0x40] sm:$0xff] %v1565_v55   ;;  %1705 = vst [vmem:[%s2153_s30 + $0xc0] sm:$0xff] %v1645_v56   ;;  %v1812_v57 = vpop.f32.mrb[18].mxu0  ;;  %v1860_v58 = vpop.f32.mrb[18].mxu1 }
 0x112   : > { %v644_v59 = vpop.f32.mrb[19].mxu0  ;;  %v804_v60 = vpop.f32.mrb[19].mxu1 }
 0x113   : > { %v1570_v61 = vpack.c.bf16 %v1812_v57, %v644_v59  ;;  %v1650_v62 = vpack.c.bf16 %v1860_v58, %v804_v60 }
 0x115   : > { %1690 = vst [vmem:[%s2153_s30 + $0x48] sm:$0xff] %v1570_v61   ;;  %1706 = vst [vmem:[%s2153_s30 + $0xc8] sm:$0xff] %v1650_v62   ;;  %v1815_v63 = vpop.f32.mrb[20].mxu0  ;;  %v1863_v0 = vpop.f32.mrb[20].mxu1 }
 0x116   : > { %v654_v1 = vpop.f32.mrb[21].mxu0  ;;  %v814_v2 = vpop.f32.mrb[21].mxu1 }
 0x117   : > { %v1575_v3 = vpack.c.bf16 %v1815_v63, %v654_v1  ;;  %v1655_v4 = vpack.c.bf16 %v1863_v0, %v814_v2 }
 0x119   : > { %1691 = vst [vmem:[%s2153_s30 + $0x50] sm:$0xff] %v1575_v3   ;;  %1707 = vst [vmem:[%s2153_s30 + $0xd0] sm:$0xff] %v1655_v4   ;;  %v1818_v5 = vpop.f32.mrb[22].mxu0  ;;  %v1866_v6 = vpop.f32.mrb[22].mxu1 }
 0x11a   : > { %v664_v7 = vpop.f32.mrb[23].mxu0  ;;  %v824_v8 = vpop.f32.mrb[23].mxu1 }
 0x11b   : > { %v1580_v9 = vpack.c.bf16 %v1818_v5, %v664_v7  ;;  %v1660_v10 = vpack.c.bf16 %v1866_v6, %v824_v8 }
 0x11d   : > { %1692 = vst [vmem:[%s2153_s30 + $0x58] sm:$0xff] %v1580_v9   ;;  %1708 = vst [vmem:[%s2153_s30 + $0xd8] sm:$0xff] %v1660_v10   ;;  %v1821_v11 = vpop.f32.mrb[24].mxu0  ;;  %v1869_v12 = vpop.f32.mrb[24].mxu1 }
 0x11e   : > { %v674_v13 = vpop.f32.mrb[25].mxu0  ;;  %v834_v14 = vpop.f32.mrb[25].mxu1 }
 0x11f   : > { %v1585_v15 = vpack.c.bf16 %v1821_v11, %v674_v13  ;;  %v1665_v16 = vpack.c.bf16 %v1869_v12, %v834_v14 }
 0x121   : > { %1693 = vst [vmem:[%s2153_s30 + $0x60] sm:$0xff] %v1585_v15   ;;  %1709 = vst [vmem:[%s2153_s30 + $0xe0] sm:$0xff] %v1665_v16   ;;  %v1824_v17 = vpop.f32.mrb[26].mxu0  ;;  %v1872_v18 = vpop.f32.mrb[26].mxu1 }
 0x122   : > { %v684_v19 = vpop.f32.mrb[27].mxu0  ;;  %v844_v20 = vpop.f32.mrb[27].mxu1 }
 0x123   : > { %v1590_v21 = vpack.c.bf16 %v1824_v17, %v684_v19  ;;  %v1670_v22 = vpack.c.bf16 %v1872_v18, %v844_v20 }
 0x125   : > { %1694 = vst [vmem:[%s2153_s30 + $0x68] sm:$0xff] %v1590_v21   ;;  %1710 = vst [vmem:[%s2153_s30 + $0xe8] sm:$0xff] %v1670_v22   ;;  %v1827_v23 = vpop.f32.mrb[28].mxu0  ;;  %v1875_v24 = vpop.f32.mrb[28].mxu1 }
 0x126   : > { %v694_v25 = vpop.f32.mrb[29].mxu0  ;;  %v854_v26 = vpop.f32.mrb[29].mxu1 }
 0x127   : > { %v1595_v27 = vpack.c.bf16 %v1827_v23, %v694_v25  ;;  %v1675_v28 = vpack.c.bf16 %v1875_v24, %v854_v26 }
 0x129   : > { %1695 = vst [vmem:[%s2153_s30 + $0x70] sm:$0xff] %v1595_v27   ;;  %1711 = vst [vmem:[%s2153_s30 + $0xf0] sm:$0xff] %v1675_v28   ;;  %v1830_v29 = vpop.f32.mrb[30].mxu0  ;;  %v1878_v30 = vpop.f32.mrb[30].mxu1 }
 0x12a   : > { %v704_v31 = vpop.f32.mrb[31].mxu0  ;;  %v864_v32 = vpop.f32.mrb[31].mxu1 }
 0x12b   : > { %v1600_v33 = vpack.c.bf16 %v1830_v29, %v704_v31  ;;  %v1680_v34 = vpack.c.bf16 %v1878_v30, %v864_v32 }
 0x12d   : > { %1696 = vst [vmem:[%s2153_s30 + $0x78] sm:$0xff] %v1600_v33   ;;  %1712 = vst [vmem:[%s2153_s30 + $0xf8] sm:$0xff] %v1680_v34  }
 0x12e PF: > { %s12_s13 = sadd.s32 1, %s1963_s13   ;;  %s2205_s9 = smov %s1955_s11 }
 0x12f   : > { %p9_p7 = scmp.ge.s32.totalorder %s12_s13, 10   ;;  %s2206_s10 = smov %s1959_s12 }
 0x130   : > { %s2207_s11 = smov %s2210_s14  ;;  %s2208_s12 = smov %s2214_s15 }
 0x131   :  { %11 = sbr.rel (!%p9_p7) target bundleno = 3 (0x3), region = 61 }

// kernel: feature_extractor_forward.7
= control target key start
LH: loop header
LB: loop body
LE: loop exit
PB: predicated region body
PF: predicated region fallthrough
CT: control target
= control target key end

     0   :  { %s526_s0 = inlined_call_operand.vmem [shape: s32[2], index: 0, kind: input, shape index: {}]   ;;  %s527_s1 = inlined_call_operand.vmem [shape: f32[2,36,128], index: 1, kind: input, shape index: {}]   ;;  %s528_s2 = inlined_call_operand.vmem [shape: f32[1,128], index: 2, kind: input, shape index: {}]   ;;  %s529_s3 = inlined_call_operand.vmem [shape: f32[2,37,128], index: 3, kind: output, shape index: {}]  }
   0x1   :  { %s8_s14 = sshll.u32 %s526_s0, 4  ;;  %s9_s14 = int_to_ptr.vmem [resolvable:$true] %s8_s14 }
   0x2   :  { %s404_s15 = scalar_lea.vmem %s9_s14, 16  ;;  %p409_p1 = scmp.lt.s32.totalorder %s9_s14, %s9_s14 }
   0x3   :  { %p405_p0 = scmp.ne.s32.totalorder %s9_s14, %s404_s15  ;;  %p410_p2 = scmp.lt.s32.totalorder %s404_s15, %s404_s15 }
   0x5   :  { %p411_p3 = por %p410_p2, %p409_p1 }
   0x7   :  { %p412_p4 = pnand %p411_p3, %p405_p0 }
   0x9   :  { %415 = shalt.err (!%p412_p4)  }
   0xa   :  { %s442_s16 = smov [#allocation3]  }
   0xb   :  { %11 = dma.vmem_to_smem %s9_s14, 16, %s442_s16, [#allocation2] }
   0xc   :  { %428 = dma.done.wait [#allocation2], 16 }
   0xd   :  { %429 = vsyncadd [#allocation2], 4294967280 }
   0xe   :  { %13 = sfence }
   0xf   :  { %s466_s17 = smov 0   ;;  %s468_s18 = smov 0  }
  0x10   :  { %s470_s19 = smov 0  }
  0x11 LB: > { %s31_s0 = sadd.s32 1, %s436_s18  ;;  %p371_p5 = scmp.ge.s32.totalorder %s440_s19, 1  ;;  %s440_s19 = sphi %s470_s19, %s19_s19   ;;  %s436_s18 = sphi %s468_s18, %s531_s18   ;;  %s432_s17 = sphi %s466_s17, %s530_s17  }
  0x12   : > { %p33_p6 = scmp.ge.s32.totalorder %s31_s0, 2  ;;  %p146_p7 = scmp.lt.s32.totalorder %s440_s19, 3 }
  0x14   : > { %s533_s0 = smov (%p33_p6, %s31_s0), 0  ;;  %p147_p8 = pnand %p371_p5, %p146_p7 }
  0x15   : > { %p177_p9 = scmp.lt.s32.totalorder (!%p147_p8), %s432_s17, 1  ;;  %s484_s20 = sld [smem:[#allocation3 + %s432_s17]] (!%p147_p8)  ;;  %v197_v0 = vlaneseq (!%p147_p8)  ;;  %v214_v6 = vld [vmem:[%s528_s2] sm:$0x1] (!%p147_p8)  ;;  %vm244_vm5 = vcmask (!%p147_p8), 1043456  }
  0x16   : > { %150 = sbr.rel (%p147_p8) target bundleno = 59 (0x3b), region = 28 }
  0x17   : > { %v198_v1 = vshrl.u32 (!%p147_p8), %v197_v0, 7 }
  0x19   : > { %v199_v2 = vadd.s32 (!%p147_p8), 8, %v198_v1  ;;  %v200_v3 = vadd.s32 (!%p147_p8), 16, %v198_v1  ;;  %v201_v4 = vadd.s32 (!%p147_p8), 24, %v198_v1  ;;  %v202_v5 = vadd.s32 (!%p147_p8), 32, %v198_v1 }
  0x1a   : > { %v228_v7 = vsub.s32 (!%p147_p8), 0, %v198_v1 }
  0x1b   : > { %v203_v8 = vstv (!%p147_p8), %s484_s20  ;;  %p253_p10 = scmp.gt.s32.totalorder (!%p147_p8), %s484_s20, 1  ;;  %p259_p11 = scmp.gt.s32.totalorder (!%p147_p8), %s484_s20, 0 }
  0x1c   : > { %vm204_vm0 = vcmp.lt.s32.totalorder (!%p147_p8), %v198_v1, %v203_v8  ;;  %vm205_vm1 = vcmp.lt.s32.totalorder (!%p147_p8), %v199_v2, %v203_v8  ;;  %vm206_vm2 = vcmp.lt.s32.totalorder (!%p147_p8), %v200_v3, %v203_v8  ;;  %vm207_vm3 = vcmp.lt.s32.totalorder (!%p147_p8), %v201_v4, %v203_v8 }
  0x1d   : > { %s535_s17 = smov (!%p177_p9, %s432_s17), 1  ;;  %vm208_vm4 = vcmp.lt.s32.totalorder %v202_v5, %v203_v8  ;;  %v229_v14 = vrot.slane %v214_v6, %v228_v7 }
  0x1e   : > { %s376_s21 = smul.u32 40, %s535_s17 }
  0x1f   : > { %s254_s30 = scalar_select %p253_p10, %s484_s20, 1 }
  0x20   : > { %s184_s26 = scalar_lea.vmem %s527_s1, %s376_s21  ;;  %s497_s29 = scalar_lea.vmem %s529_s3, %s376_s21 }
  0x21   : > { %v209_v9 = vld [vmem:[%s184_s26] sm:$0xff]  ;;  %v210_v10 = vld [vmem:[%s184_s26 + $0x8] sm:$0xff]  ;;  %v211_v11 = vld [vmem:[%s184_s26 + $0x10] sm:$0xff]  ;;  %s255_s4 = scvt.s32.f32 %s254_s30 }
  0x22   : > { %v212_v12 = vld [vmem:[%s184_s26 + $0x18] sm:$0xff]  ;;  %v213_v13 = vld [vmem:[%s184_s26 + $0x20] sm:$0xf]  ;;  %v236_v15 = vsel %vm204_vm0, %v209_v9, 0.0  ;;  %v237_v16 = vsel %vm205_vm1, %v210_v10, 0.0  ;;  %v238_v17 = vsel %vm206_vm2, %v211_v11, 0.0  ;;  %v231_v21 = vsel %vm204_vm0, %v209_v9, %v229_v14 }
  0x23   : > { %v240_v18 = vsel %vm208_vm4, %v213_v13, 0.0  ;;  %v241_v19 = vadd.f32 %v237_v16, %v236_v15  ;;  %v239_v20 = vsel %vm207_vm3, %v212_v12, 0.0  ;;  %v232_v22 = vsel %vm205_vm1, %v210_v10, %v229_v14  ;;  %265 = vst [vmem:[%s497_s29 + $0x1] sm:$0xff] %v231_v21  ;;  %s260_s5 = scalar_select %p259_p11, 1, 0 }
  0x24   : > { %v233_v23 = vsel %vm206_vm2, %v211_v11, %v229_v14  ;;  %266 = vst [vmem:[%s497_s29 + $0x9] sm:$0xff] %v232_v22  ;;  %v234_v25 = vsel %vm207_vm3, %v212_v12, %v229_v14  ;;  %v235_v26 = vsel %vm208_vm4, %v213_v13, %v229_v14  ;;  %v245_v27 = vsel %vm244_vm5, %v240_v18, 0.0 }
  0x25   : > { %v242_v24 = vadd.f32 %v241_v19, %v238_v17  ;;  %267 = vst [vmem:[%s497_s29 + $0x11] sm:$0xff] %v233_v23  ;;  %268 = vst [vmem:[%s497_s29 + $0x19] sm:$0xff] %v234_v25  ;;  %v256_v29 = vstv %s255_s4  ;;  %v261_v36 = vstv %s260_s5 }
  0x26   : > { %269 = vst [vmem:[%s497_s29 + $0x21] sm:$0xf] %v235_v26  ;;  %402 = vrcp.f32 %v256_v29  ;;  %vm262_vm6 = vcmp.eq.s32.totalorder %v261_v36, 1 }
  0x27   : > { %v243_v28 = vadd.f32 %v242_v24, %v239_v20 }
  0x29   : > { %v246_v30 = vadd.f32 %v245_v27, %v243_v28 }
  0x2b   : > { %v247_v31 = vrot.slane %v246_v30, 4 }
  0x2d   : > { %v248_v32 = vadd.f32 %v247_v31, %v246_v30 }
  0x2f   : > { %v249_v33 = vrot.slane %v248_v32, 2 }
  0x30   : > { %v403_v37 = vpop.eup %402 }
  0x31   : > { %v250_v34 = vadd.f32 %v249_v33, %v248_v32 }
  0x33   : > { %v251_v35 = vrot.slane %v250_v34, 1 }
  0x35   : > { %v252_v38 = vadd.f32 %v251_v35, %v250_v34 }
  0x37   : > { %v258_v39 = vmul.f32 %v403_v37, %v252_v38 }
  0x39   : > { %v263_v40 = vsel %vm262_vm6, %v258_v39, %v214_v6 }
  0x3a   : > { %264 = vst [vmem:[%s497_s29] sm:$0x1] %v263_v40 }
  0x3b PF: > { %s19_s19 = sadd.s32 1, %s440_s19   ;;  %s530_s17 = smov %s436_s18 }
  0x3c   : > { %p16_p12 = scmp.ge.s32.totalorder %s19_s19, 4   ;;  %s531_s18 = smov %s533_s0 }
  0x3e   :  { %18 = sbr.rel (!%p16_p12) target bundleno = 17 (0x11), region = 61 }

// kernel: feature_extractor_forward.6
= control target key start
LH: loop header
LB: loop body
LE: loop exit
PB: predicated region body
PF: predicated region fallthrough
CT: control target
= control target key end

     0   :  { %vm2512_vm0 = vmmov 0   ;;  %s3145_s1 = inlined_call_operand.vmem [shape: bf16[1664,128], index: 1, kind: input, shape index: {}]   ;;  %s3146_s0 = inlined_call_operand.vmem [shape: bf16[72,1664], index: 0, kind: input, shape index: {}]   ;;  %s3147_s2 = inlined_call_operand.vmem [shape: f32[1,128], index: 2, kind: input, shape index: {}]   ;;  %s3148_s3 = inlined_call_operand.vmem [shape: f32[72,128], index: 3, kind: output, shape index: {}]  }
   0x1   :  { %v2318_v0 = vld [vmem:[%s3145_s1 + $0x40] sm:$0xff]   ;;  %v2322_v4 = vld [vmem:[%s3145_s1 + $0x48] sm:$0xff]   ;;  %v2326_v8 = vld [vmem:[%s3145_s1 + $0x50] sm:$0xff]  }
   0x2   :  { %v2319_v1 = vld [vmem:[%s3145_s1 + $0xc0] sm:$0xff]   ;;  %1975 = vmatprep.subr.bf16.mxu0 %v2318_v0  ;;  %v2323_v5 = vld [vmem:[%s3145_s1 + $0xc8] sm:$0xff]   ;;  %v2327_v9 = vld [vmem:[%s3145_s1 + $0xd0] sm:$0xff]  }
   0x3   :  { %v2320_v2 = vld [vmem:[%s3145_s1] sm:$0xff]   ;;  %2021 = vmatprep.subr.bf16.mxu1 %v2319_v1  ;;  %v2324_v6 = vld [vmem:[%s3145_s1 + $0x8] sm:$0xff]   ;;  %v2328_v10 = vld [vmem:[%s3145_s1 + $0x10] sm:$0xff]  }
   0x4   :  { %v2321_v3 = vld [vmem:[%s3145_s1 + $0x80] sm:$0xff]   ;;  %1976 = vmatpush3.bf16.msra.mxu0 %v2320_v2  ;;  %v2325_v7 = vld [vmem:[%s3145_s1 + $0x88] sm:$0xff]   ;;  %v2329_v11 = vld [vmem:[%s3145_s1 + $0x90] sm:$0xff]  }
   0x5   :  { %2022 = vmatpush3.bf16.msra.mxu1 %v2321_v3  ;;  %1977 = vmatprep.subr.bf16.mxu0 %v2322_v4  ;;  %v2330_v12 = vld [vmem:[%s3145_s1 + $0x58] sm:$0xff]   ;;  %v2334_v16 = vld [vmem:[%s3145_s1 + $0x60] sm:$0xff]   ;;  %v2338_v20 = vld [vmem:[%s3145_s1 + $0x68] sm:$0xff]  }
   0x6   :  { %2023 = vmatprep.subr.bf16.mxu1 %v2323_v5  ;;  %v2331_v13 = vld [vmem:[%s3145_s1 + $0xd8] sm:$0xff]   ;;  %v2335_v17 = vld [vmem:[%s3145_s1 + $0xe0] sm:$0xff]   ;;  %v2339_v21 = vld [vmem:[%s3145_s1 + $0xe8] sm:$0xff]  }
   0x7   :  { %v2332_v14 = vld [vmem:[%s3145_s1 + $0x18] sm:$0xff]   ;;  %v2336_v18 = vld [vmem:[%s3145_s1 + $0x20] sm:$0xff]   ;;  %v2340_v22 = vld [vmem:[%s3145_s1 + $0x28] sm:$0xff]  }
   0x8   :  { %1978 = vmatpush3.bf16.msra.mxu0 %v2324_v6  ;;  %v2333_v15 = vld [vmem:[%s3145_s1 + $0x98] sm:$0xff]   ;;  %v2337_v19 = vld [vmem:[%s3145_s1 + $0xa0] sm:$0xff]   ;;  %v2341_v23 = vld [vmem:[%s3145_s1 + $0xa8] sm:$0xff]  }
   0x9   :  { %2024 = vmatpush3.bf16.msra.mxu1 %v2325_v7  ;;  %1979 = vmatprep.subr.bf16.mxu0 %v2326_v8  ;;  %v2342_v24 = vld [vmem:[%s3145_s1 + $0x70] sm:$0xff]   ;;  %v2346_v28 = vld [vmem:[%s3145_s1 + $0x78] sm:$0xff]   ;;  %v2355_v35 = vld [vmem:[%s3146_s0 + $0xc] ss:$52 sps:$4 sm:$0xff]  }
   0xa   :  { %2025 = vmatprep.subr.bf16.mxu1 %v2327_v9  ;;  %v2343_v25 = vld [vmem:[%s3145_s1 + $0xf0] sm:$0xff]   ;;  %v2347_v29 = vld [vmem:[%s3145_s1 + $0xf8] sm:$0xff]   ;;  %v2356_v36 = vld [vmem:[%s3145_s1 + $0x140] sm:$0xff]   ;;  %1346 = vmatprep.mubr.bf16.mxu1 %v2355_v35 }
   0xb   :  { %v2344_v26 = vld [vmem:[%s3145_s1 + $0x30] sm:$0xff]   ;;  %v2348_v30 = vld [vmem:[%s3145_s1 + $0x38] sm:$0xff]   ;;  %v2357_v37 = vld [vmem:[%s3145_s1 + $0x100] sm:$0xff]  }
   0xc   :  { %1980 = vmatpush3.bf16.msra.mxu0 %v2328_v10  ;;  %v2345_v27 = vld [vmem:[%s3145_s1 + $0xb0] sm:$0xff]   ;;  %v2349_v31 = vld [vmem:[%s3145_s1 + $0xb8] sm:$0xff]   ;;  %v2358_v38 = vld [vmem:[%s3145_s1 + $0x148] sm:$0xff]  }
   0xd   :  { %2026 = vmatpush3.bf16.msra.mxu1 %v2329_v11  ;;  %1981 = vmatprep.subr.bf16.mxu0 %v2330_v12  ;;  %v2350_v32 = vld [vmem:[%s3146_s0] ss:$52 sps:$4 sm:$0xff]   ;;  %v2352_v33 = vld [vmem:[%s3146_s0 + $0x4] ss:$52 sps:$4 sm:$0xff]   ;;  %v2353_v34 = vld [vmem:[%s3146_s0 + $0x8] ss:$52 sps:$4 sm:$0xff]  }
   0xe   :  { %2027 = vmatprep.subr.bf16.mxu1 %v2331_v13  ;;  %1274 = vmatprep.mubr.bf16.mxu0 %v2352_v33  ;;  %v2359_v39 = vld [vmem:[%s3145_s1 + $0x108] sm:$0xff]   ;;  %v2365_v43 = vld [vmem:[%s3146_s0 + $0x70] ss:$52 sps:$4 sm:$0xff]   ;;  %v2376_v52 = vld [vmem:[%s3145_s1 + $0x158] sm:$0xff]  }
   0xf   :  { %v2360_v40 = vld [vmem:[%s3146_s0 + $0x6c] ss:$52 sps:$4 sm:$0xff]   ;;  %v2362_v41 = vld [vmem:[%s3146_s0 + $0x74] ss:$52 sps:$4 sm:$0xff]   ;;  %v2374_v51 = vld [vmem:[%s3146_s0 + $0xdc] ss:$52 sps:$4 sm:$0xff]  }
  0x10   :  { %1982 = vmatpush3.bf16.msra.mxu0 %v2332_v14  ;;  %v2364_v42 = vld [vmem:[%s3146_s0 + $0x68] ss:$52 sps:$4 sm:$0xff]   ;;  %v2366_v44 = vld [vmem:[%s3145_s1 + $0x1c0] sm:$0xff]   ;;  %v2368_v46 = vld [vmem:[%s3145_s1 + $0x150] sm:$0xff]  }
  0x11   :  { %2028 = vmatpush3.bf16.msra.mxu1 %v2333_v15  ;;  %1983 = vmatprep.subr.bf16.mxu0 %v2334_v16  ;;  %v2367_v45 = vld [vmem:[%s3145_s1 + $0x180] sm:$0xff]   ;;  %v2369_v47 = vld [vmem:[%s3145_s1 + $0x110] sm:$0xff]   ;;  %v2370_v48 = vld [vmem:[%s3145_s1 + $0x1c8] sm:$0xff]  }
  0x12   :  { %2029 = vmatprep.subr.bf16.mxu1 %v2335_v17  ;;  %v2371_v49 = vld [vmem:[%s3145_s1 + $0x188] sm:$0xff]   ;;  %v2377_v53 = vld [vmem:[%s3146_s0 + $0xd0] ss:$52 sps:$4 sm:$0xff]   ;;  %v2379_v55 = vld [vmem:[%s3145_s1 + $0x118] sm:$0xff]  }
  0x13   :  { %v2372_v50 = vld [vmem:[%s3146_s0 + $0xd4] ss:$52 sps:$4 sm:$0xff]   ;;  %v2378_v54 = vld [vmem:[%s3146_s0 + $0xd8] ss:$52 sps:$4 sm:$0xff]   ;;  %v2382_v58 = vld [vmem:[%s3145_s1 + $0x160] sm:$0xff]  }
  0x14   :  { %1984 = vmatpush3.bf16.msra.mxu0 %v2336_v18  ;;  %v2380_v56 = vld [vmem:[%s3145_s1 + $0x1d0] sm:$0xff]   ;;  %v2383_v59 = vld [vmem:[%s3145_s1 + $0x1d8] sm:$0xff]   ;;  %v2384_v60 = vld [vmem:[%s3145_s1 + $0x120] sm:$0xff]  }
  0x15   :  { %2030 = vmatpush3.bf16.msra.mxu1 %v2337_v19  ;;  %1985 = vmatprep.subr.bf16.mxu0 %v2338_v20  ;;  %v2381_v57 = vld [vmem:[%s3145_s1 + $0x190] sm:$0xff]   ;;  %v2385_v61 = vld [vmem:[%s3145_s1 + $0x198] sm:$0xff]   ;;  %v2392_v2 = vld [vmem:[%s3145_s1 + $0x1e0] sm:$0xff]  }
  0x16   :  { %2031 = vmatprep.subr.bf16.mxu1 %v2339_v21  ;;  %v2386_v62 = vld [vmem:[%s3146_s0 + $0x13c] ss:$52 sps:$4 sm:$0xff]   ;;  %v2388_v63 = vld [vmem:[%s3146_s0 + $0x144] ss:$52 sps:$4 sm:$0xff]   ;;  %v2391_v1 = vld [vmem:[%s3146_s0 + $0x140] ss:$52 sps:$4 sm:$0xff]  }
  0x17   :  { %v2390_v0 = vld [vmem:[%s3146_s0 + $0x138] ss:$52 sps:$4 sm:$0xff]   ;;  %v2394_v4 = vld [vmem:[%s3145_s1 + $0x1a0] sm:$0xff]   ;;  %v2398_v8 = vld [vmem:[%s3145_s1 + $0x170] sm:$0xff]  }
  0x18   :  { %1986 = vmatpush3.bf16.msra.mxu0 %v2340_v22  ;;  %v2393_v3 = vld [vmem:[%s3145_s1 + $0x168] sm:$0xff]   ;;  %v93_v9 = vld [vmem:[%s3146_s0 + $0x1a0] sm:$0xff]  ;;  %v2401_v14 = vld [vmem:[%s3145_s1 + $0x130] sm:$0xff]  }
  0x19   :  { %2032 = vmatpush3.bf16.msra.mxu1 %v2341_v23  ;;  %1987 = vmatprep.subr.bf16.mxu0 %v2342_v24  ;;  %v2395_v5 = vld [vmem:[%s3145_s1 + $0x128] sm:$0xff]   ;;  %v1858_v10 = vcombine.high %v93_v9, %v93_v9  ;;  %v1857_v12 = vcombine.low %v93_v9, %v93_v9  ;;  %v2404_v16 = vld [vmem:[%s3145_s1 + $0x1f0] sm:$0xff]   ;;  %v2406_v18 = vld [vmem:[%s3145_s1 + $0x178] sm:$0xff]  }
  0x1a   :  { %2033 = vmatprep.subr.bf16.mxu1 %v2343_v25  ;;  %v2396_v6 = vld [vmem:[%s3145_s1 + $0x1e8] sm:$0xff]   ;;  %v2405_v17 = vld [vmem:[%s3145_s1 + $0x1b0] sm:$0xff]   ;;  %v2407_v19 = vld [vmem:[%s3145_s1 + $0x138] sm:$0xff]  }
  0x1b   :  { %v2397_v7 = vld [vmem:[%s3145_s1 + $0x1a8] sm:$0xff]   ;;  %v2408_v20 = vld [vmem:[%s3145_s1 + $0x1f8] sm:$0xff]   ;;  %v2410_v22 = vld [vmem:[%s3146_s0 + $0x10] ss:$52 sps:$4 sm:$0xff]  }
  0x1c   :  { %1988 = vmatpush3.bf16.msra.mxu0 %v2344_v26  ;;  %v94_v11 = vld [vmem:[%s3146_s0 + $0x1a8] sm:$0xff]  ;;  %v2409_v21 = vld [vmem:[%s3145_s1 + $0x1b8] sm:$0xff]   ;;  %v2416_v26 = vld [vmem:[%s3145_s1 + $0x240] sm:$0xff]  }
  0x1d   :  { %2034 = vmatpush3.bf16.msra.mxu1 %v2345_v27  ;;  %1989 = vmatprep.subr.bf16.mxu0 %v2346_v28  ;;  %v1860_v13 = vcombine.high %v94_v11, %v94_v11  ;;  %v1859_v15 = vcombine.low %v94_v11, %v94_v11  ;;  %v2412_v23 = vld [vmem:[%s3146_s0 + $0x14] ss:$52 sps:$4 sm:$0xff]   ;;  %v2413_v24 = vld [vmem:[%s3146_s0 + $0x18] ss:$52 sps:$4 sm:$0xff]   ;;  %v2415_v25 = vld [vmem:[%s3146_s0 + $0x1c] ss:$52 sps:$4 sm:$0xff]  }
  0x1e   :  { %2035 = vmatprep.subr.bf16.mxu1 %v2347_v29  ;;  %v2417_v27 = vld [vmem:[%s3145_s1 + $0x200] sm:$0xff]   ;;  %v2418_v28 = vld [vmem:[%s3145_s1 + $0x248] sm:$0xff]   ;;  %v2467_v9 = vld [vmem:[%s3145_s1 + $0x238] sm:$0xff]  }
  0x1f   :  { %v2419_v29 = vld [vmem:[%s3145_s1 + $0x208] sm:$0xff]   ;;  %v2425_v33 = vld [vmem:[%s3146_s0 + $0x80] ss:$52 sps:$4 sm:$0xff]   ;;  %v2469_v11 = vld [vmem:[%s3145_s1 + $0x2b8] sm:$0xff]  }
  0x20   :  { %1990 = vmatpush3.bf16.msra.mxu0 %v2348_v30  ;;  %v2420_v30 = vld [vmem:[%s3146_s0 + $0x7c] ss:$52 sps:$4 sm:$0xff]   ;;  %v2427_v35 = vld [vmem:[%s3145_s1 + $0x280] sm:$0xff]  }
  0x21   :  { %2036 = vmatpush3.bf16.msra.mxu1 %v2349_v31  ;;  %2067 = vmatprep.subr.bf16.mxu0 %v2356_v36  ;;  %v2422_v31 = vld [vmem:[%s3146_s0 + $0x84] ss:$52 sps:$4 sm:$0xff]   ;;  %v2428_v36 = vld [vmem:[%s3145_s1 + $0x250] sm:$0xff]  }
  0x22   :  { %2113 = vmatprep.subr.bf16.mxu1 %v2366_v44  ;;  %v2438_v44 = vld [vmem:[%s3146_s0 + $0xe8] ss:$52 sps:$4 sm:$0xff]  }
  0x23   :  { %1275 = vmatmul.mubr.bf16.vlgmr.msra.gmra.mrb[0].mxu0 %v2350_v32  ;;  %v2424_v32 = vld [vmem:[%s3146_s0 + $0x78] ss:$52 sps:$4 sm:$0xff]  }
  0x24   :  { %1347 = vmatmul.mubr.bf16.vlgmr.msra.gmra.mrb[0].mxu1 %v2353_v34  ;;  %2068 = vmatpush3.bf16.msra.mxu0 %v2357_v37  ;;  %v2426_v34 = vld [vmem:[%s3145_s1 + $0x2c0] sm:$0xff]   ;;  %v2429_v37 = vld [vmem:[%s3145_s1 + $0x210] sm:$0xff]  }
  0x25   :  { %2069 = vmatprep.subr.bf16.mxu0 %v2358_v38  ;;  %1282 = vmatprep.mubr.bf16.mxu0 %v2360_v40  ;;  %v2430_v38 = vld [vmem:[%s3145_s1 + $0x2c8] sm:$0xff]   ;;  %v2432_v40 = vld [vmem:[%s3146_s0 + $0xe4] ss:$52 sps:$4 sm:$0xff]  }
  0x26   :  { %1354 = vmatprep.mubr.bf16.mxu1 %v2362_v41  ;;  %2114 = vmatpush3.bf16.msra.mxu1 %v2367_v45  ;;  %v2434_v41 = vld [vmem:[%s3146_s0 + $0xec] ss:$52 sps:$4 sm:$0xff]   ;;  %v2439_v45 = vld [vmem:[%s3145_s1 + $0x218] sm:$0xff]  }
  0x27   :  { %2115 = vmatprep.subr.bf16.mxu1 %v2370_v48  ;;  %v2442_v48 = vld [vmem:[%s3145_s1 + $0x260] sm:$0xff]  }
  0x28   :  { %2070 = vmatpush3.bf16.msra.mxu0 %v2359_v39  ;;  %v2431_v39 = vld [vmem:[%s3145_s1 + $0x288] sm:$0xff]  }
  0x29   :  { %2071 = vmatprep.subr.bf16.mxu0 %v2368_v46  ;;  %v2440_v46 = vld [vmem:[%s3145_s1 + $0x2d0] sm:$0xff]  }
  0x2a   :  { %2116 = vmatpush3.bf16.msra.mxu1 %v2371_v49  ;;  %v2443_v49 = vld [vmem:[%s3145_s1 + $0x2d8] sm:$0xff]  }
  0x2b   :  { %1283 = vmatmul.mubr.bf16.gmra.mrb[4].mxu0 %v2364_v42  ;;  %2117 = vmatprep.subr.bf16.mxu1 %v2380_v56  ;;  %v2436_v42 = vld [vmem:[%s3145_s1 + $0x258] sm:$0xff]   ;;  %v2452_v56 = vld [vmem:[%s3145_s1 + $0x2e0] sm:$0xff]  }
  0x2c   :  { %1355 = vmatmul.mubr.bf16.gmra.mrb[4].mxu1 %v2365_v43  ;;  %2072 = vmatpush3.bf16.msra.mxu0 %v2369_v47  ;;  %v2437_v43 = vld [vmem:[%s3146_s0 + $0xe0] ss:$52 sps:$4 sm:$0xff]  }
  0x2d   :  { %1290 = vmatprep.mubr.bf16.mxu0 %v2372_v50  ;;  %1362 = vmatprep.mubr.bf16.mxu1 %v2374_v51  ;;  %v2441_v47 = vld [vmem:[%s3145_s1 + $0x290] sm:$0xff]   ;;  %v2444_v50 = vld [vmem:[%s3145_s1 + $0x220] sm:$0xff]   ;;  %v2445_v51 = vld [vmem:[%s3145_s1 + $0x298] sm:$0xff]  }
  0x2e   :  { %2073 = vmatprep.subr.bf16.mxu0 %v2376_v52  ;;  %2118 = vmatpush3.bf16.msra.mxu1 %v2381_v57  ;;  %v2446_v52 = vld [vmem:[%s3146_s0 + $0x14c] ss:$52 sps:$4 sm:$0xff]  }
  0x2f   :  { %2119 = vmatprep.subr.bf16.mxu1 %v2383_v59  ;;  %v2453_v57 = vld [vmem:[%s3145_s1 + $0x268] sm:$0xff]  }
  0x30   :  { %2074 = vmatpush3.bf16.msra.mxu0 %v2379_v55  ;;  %v2451_v55 = vld [vmem:[%s3146_s0 + $0x150] ss:$52 sps:$4 sm:$0xff]   ;;  %v2455_v59 = vld [vmem:[%s3145_s1 + $0x228] sm:$0xff]  }
  0x31   :  { %2075 = vmatprep.subr.bf16.mxu0 %v2382_v58  ;;  %v2454_v58 = vld [vmem:[%s3145_s1 + $0x2a0] sm:$0xff]  }
  0x32   :  { %2120 = vmatpush3.bf16.msra.mxu1 %v2385_v61  ;;  %v2457_v61 = vld [vmem:[%s3145_s1 + $0x2a8] sm:$0xff]  }
  0x33   :  { %1291 = vmatmul.mubr.bf16.gmra.mrb[8].mxu0 %v2377_v53  ;;  %2121 = vmatprep.subr.bf16.mxu1 %v2392_v2  ;;  %v2448_v53 = vld [vmem:[%s3146_s0 + $0x154] ss:$52 sps:$4 sm:$0xff]  }
  0x34   :  { %1363 = vmatmul.mubr.bf16.gmra.mrb[8].mxu1 %v2378_v54  ;;  %2076 = vmatpush3.bf16.msra.mxu0 %v2384_v60  ;;  %v2450_v54 = vld [vmem:[%s3146_s0 + $0x148] ss:$52 sps:$4 sm:$0xff]  }
  0x35   :  { %1298 = vmatprep.mubr.bf16.mxu0 %v2386_v62  ;;  %1370 = vmatprep.mubr.bf16.mxu1 %v2388_v63  ;;  %v2456_v60 = vld [vmem:[%s3145_s1 + $0x2e8] sm:$0xff]   ;;  %v2458_v62 = vld [vmem:[%s3145_s1 + $0x270] sm:$0xff]  }
  0x36   :  { %2077 = vmatprep.subr.bf16.mxu0 %v2393_v3  ;;  %2122 = vmatpush3.bf16.msra.mxu1 %v2394_v4  ;;  %v95_v63 = vld [vmem:[%s3146_s0 + $0x1b0] sm:$0xff] }
  0x37   :  { %2123 = vmatprep.subr.bf16.mxu1 %v2396_v6  ;;  %v2461_v3 = vld [vmem:[%s3145_s1 + $0x230] sm:$0xff]   ;;  %v1861_v4 = vcombine.low %v95_v63, %v95_v63 }
  0x38   :  { %2078 = vmatpush3.bf16.msra.mxu0 %v2395_v5  ;;  %v2464_v6 = vld [vmem:[%s3145_s1 + $0x2f0] sm:$0xff]  }
  0x39   :  { %2079 = vmatprep.subr.bf16.mxu0 %v2398_v8  ;;  %v2466_v8 = vld [vmem:[%s3145_s1 + $0x278] sm:$0xff]  }
  0x3a   :  { %2124 = vmatpush3.bf16.msra.mxu1 %v2397_v7  ;;  %v2465_v7 = vld [vmem:[%s3145_s1 + $0x2b0] sm:$0xff]  }
  0x3b   :  { %1299 = vmatmul.mubr.bf16.gmra.mrb[12].mxu0 %v2390_v0  ;;  %2125 = vmatprep.subr.bf16.mxu1 %v2404_v16  ;;  %v96_v0 = vld [vmem:[%s3146_s0 + $0x1b8] sm:$0xff]  ;;  %v2475_v16 = vld [vmem:[%s3146_s0 + $0x2c] ss:$52 sps:$4 sm:$0xff]  }
  0x3c   :  { %1371 = vmatmul.mubr.bf16.gmra.mrb[12].mxu1 %v2391_v1  ;;  %1306 = vmatprep.mubr.bf16.mxu0 %v1858_v10  ;;  %v1862_v1 = vcombine.high %v95_v63, %v95_v63  ;;  %v1864_v2 = vcombine.high %v96_v0, %v96_v0  ;;  %v1863_v5 = vcombine.low %v96_v0, %v96_v0  ;;  %v2468_v10 = vld [vmem:[%s3145_s1 + $0x2f8] sm:$0xff]  }
  0x3d   :  { %1378 = vmatprep.mubr.bf16.mxu1 %v1860_v13  ;;  %2080 = vmatpush3.bf16.msra.mxu0 %v2401_v14  ;;  %v2472_v13 = vld [vmem:[%s3146_s0 + $0x24] ss:$52 sps:$4 sm:$0xff]   ;;  %v2473_v14 = vld [vmem:[%s3146_s0 + $0x28] ss:$52 sps:$4 sm:$0xff]  }
  0x3e   :  { %2126 = vmatpush3.bf16.msra.mxu1 %v2405_v17  ;;  %2081 = vmatprep.subr.bf16.mxu0 %v2406_v18  ;;  %v2476_v17 = vld [vmem:[%s3145_s1 + $0x300] sm:$0xff]  }
  0x3f   :  { %2127 = vmatprep.subr.bf16.mxu1 %v2408_v20  ;;  %v2478_v18 = vld [vmem:[%s3146_s0 + $0x8c] ss:$52 sps:$4 sm:$0xff]   ;;  %v2480_v20 = vld [vmem:[%s3146_s0 + $0x94] ss:$52 sps:$4 sm:$0xff]  }
  0x41   :  { %2082 = vmatpush3.bf16.msra.mxu0 %v2407_v19  ;;  %v2477_v19 = vld [vmem:[%s3145_s1 + $0x308] sm:$0xff]  }
  0x42   :  { %2128 = vmatpush3.bf16.msra.mxu1 %v2409_v21  ;;  %2159 = vmatprep.subr.bf16.mxu0 %v2416_v26  ;;  %v2482_v21 = vld [vmem:[%s3146_s0 + $0x88] ss:$52 sps:$4 sm:$0xff]  }
  0x43   :  { %1307 = vmatmul.mubr.bf16.gmra.mrb[16].mxu0 %v1857_v12  ;;  %2205 = vmatprep.subr.bf16.mxu1 %v2426_v34  ;;  %v2470_v12 = vld [vmem:[%s3146_s0 + $0x20] ss:$52 sps:$4 sm:$0xff]   ;;  %v2491_v26 = vld [vmem:[%s3145_s1 + $0x318] sm:$0xff]   ;;  %v98_v34 = vld [vmem:[%s3146_s0 + $0x1c8] sm:$0xff] }
  0x44   :  { %1379 = vmatmul.mubr.bf16.gmra.mrb[16].mxu1 %v1859_v15  ;;  %1418 = vmatprep.mubr.bf16.mxu0 %v2412_v23  ;;  %v2511_v15 = vmov 0.0   ;;  %v2484_v23 = vld [vmem:[%s3145_s1 + $0x310] sm:$0xff]  }
  0x45   :  { %1490 = vmatprep.mubr.bf16.mxu1 %v2415_v25  ;;  %v2487_v25 = vld [vmem:[%s3146_s0 + $0xfc] ss:$52 sps:$4 sm:$0xff]  }
  0x4b   :  { %1419 = vmatmul.mubr.bf16.vlgmr.msra.gmra.mrb[20].mxu0 %v2410_v22  ;;  %v2483_v22 = vld [vmem:[%s3146_s0 + $0x90] ss:$52 sps:$4 sm:$0xff]  }
  0x4c   :  { %1491 = vmatmul.mubr.bf16.vlgmr.msra.gmra.mrb[20].mxu1 %v2413_v24  ;;  %2160 = vmatpush3.bf16.msra.mxu0 %v2417_v27  ;;  %v2485_v24 = vld [vmem:[%s3146_s0 + $0xf4] ss:$52 sps:$4 sm:$0xff]   ;;  %v2489_v27 = vld [vmem:[%s3146_s0 + $0xf0] ss:$52 sps:$4 sm:$0xff]  }
  0x4d   :  { %2161 = vmatprep.subr.bf16.mxu0 %v2418_v28  ;;  %1426 = vmatprep.mubr.bf16.mxu0 %v2420_v30  ;;  %v2490_v28 = vld [vmem:[%s3146_s0 + $0xf8] ss:$52 sps:$4 sm:$0xff]   ;;  %v2493_v30 = vld [vmem:[%s3146_s0 + $0x15c] ss:$52 sps:$4 sm:$0xff]  }
  0x4e   :  { %1498 = vmatprep.mubr.bf16.mxu1 %v2422_v31  ;;  %2206 = vmatpush3.bf16.msra.mxu1 %v2427_v35  ;;  %v2495_v31 = vld [vmem:[%s3146_s0 + $0x164] ss:$52 sps:$4 sm:$0xff]  }
  0x4f   :  { %2207 = vmatprep.subr.bf16.mxu1 %v2430_v38  ;;  %v2497_v35 = vld [vmem:[%s3146_s0 + $0x158] ss:$52 sps:$4 sm:$0xff]   ;;  %v1868_v38 = vcombine.high %v98_v34, %v98_v34 }
  0x50   :  { %2162 = vmatpush3.bf16.msra.mxu0 %v2419_v29  ;;  %v2492_v29 = vld [vmem:[%s3145_s1 + $0x320] sm:$0xff]  }
  0x51   :  { %2163 = vmatprep.subr.bf16.mxu0 %v2428_v36  ;;  %v2498_v36 = vld [vmem:[%s3146_s0 + $0x160] ss:$52 sps:$4 sm:$0xff]  }
  0x52   :  { %2208 = vmatpush3.bf16.msra.mxu1 %v2431_v39  ;;  %v2502_v39 = vld [vmem:[%s3145_s1 + $0x330] sm:$0xff]  }
  0x53   :  { %1427 = vmatmul.mubr.bf16.gmra.mrb[24].mxu0 %v2424_v32  ;;  %2209 = vmatprep.subr.bf16.mxu1 %v2440_v46  ;;  %v2499_v32 = vld [vmem:[%s3145_s1 + $0x328] sm:$0xff]   ;;  %v2509_v46 = vld [vmem:[%s3146_s0 + $0x1d0] ss:$0 sps:$4 sm:$0xff]  }
  0x54   :  { %1499 = vmatmul.mubr.bf16.gmra.mrb[24].mxu1 %v2425_v33  ;;  %2164 = vmatpush3.bf16.msra.mxu0 %v2429_v37  ;;  %v97_v33 = vld [vmem:[%s3146_s0 + $0x1c0] sm:$0xff] }
  0x55   :  { %1434 = vmatprep.mubr.bf16.mxu0 %v2432_v40  ;;  %1506 = vmatprep.mubr.bf16.mxu1 %v2434_v41  ;;  %v1866_v37 = vcombine.high %v97_v33, %v97_v33  ;;  %v2505_v40 = vld [vmem:[%s3145_s1 + $0x338] sm:$0xff]   ;;  %v1865_v41 = vcombine.low %v97_v33, %v97_v33 }
  0x56   :  { %2165 = vmatprep.subr.bf16.mxu0 %v2436_v42  ;;  %2210 = vmatpush3.bf16.msra.mxu1 %v2441_v47  ;;  %v1867_v42 = vcombine.low %v98_v34, %v98_v34  ;;  %v2510_v47 = vld [vmem:[%s3146_s0 + $0x100] ss:$52 sps:$4 sm:$0xff]  }
  0x57   :  { %2211 = vmatprep.subr.bf16.mxu1 %v2443_v49 }
  0x58   :  { %2166 = vmatpush3.bf16.msra.mxu0 %v2439_v45  ;;  %v2508_v45 = vld [vmem:[%s3146_s0 + $0x98] ss:$52 sps:$4 sm:$0xff]  }
  0x59   :  { %2167 = vmatprep.subr.bf16.mxu0 %v2442_v48 }
  0x5a   :  { %2212 = vmatpush3.bf16.msra.mxu1 %v2445_v51 }
  0x5b   :  { %1435 = vmatmul.mubr.bf16.gmra.mrb[28].mxu0 %v2437_v43  ;;  %2213 = vmatprep.subr.bf16.mxu1 %v2452_v56  ;;  %v2506_v43 = vld [vmem:[%s3146_s0 + $0x30] ss:$52 sps:$4 sm:$0xff]  }
  0x5c   :  { %1507 = vmatmul.mubr.bf16.gmra.mrb[28].mxu1 %v2438_v44  ;;  %2168 = vmatpush3.bf16.msra.mxu0 %v2444_v50  ;;  %v2507_v44 = vld [vmem:[%s3146_s0 + $0x168] ss:$52 sps:$4 sm:$0xff]  }
  0x5d   :  { %1442 = vmatprep.mubr.bf16.mxu0 %v2446_v52  ;;  %1514 = vmatprep.mubr.bf16.mxu1 %v2448_v53 }
  0x5e   :  { %2169 = vmatprep.subr.bf16.mxu0 %v2453_v57  ;;  %2214 = vmatpush3.bf16.msra.mxu1 %v2454_v58 }
  0x5f   :  { %2215 = vmatprep.subr.bf16.mxu1 %v2456_v60 }
  0x60   :  { %2170 = vmatpush3.bf16.msra.mxu0 %v2455_v59 }
  0x61   :  { %2171 = vmatprep.subr.bf16.mxu0 %v2458_v62 }
  0x62   :  { %2216 = vmatpush3.bf16.msra.mxu1 %v2457_v61 }
  0x63   :  { %1443 = vmatmul.mubr.bf16.gmra.mrb[32].mxu0 %v2450_v54  ;;  %2217 = vmatprep.subr.bf16.mxu1 %v2464_v6 }
  0x64   :  { %1515 = vmatmul.mubr.bf16.gmra.mrb[32].mxu1 %v2451_v55  ;;  %1450 = vmatprep.mubr.bf16.mxu0 %v1862_v1 }
  0x65   :  { %1522 = vmatprep.mubr.bf16.mxu1 %v1864_v2  ;;  %2172 = vmatpush3.bf16.msra.mxu0 %v2461_v3 }
  0x66   :  { %2218 = vmatpush3.bf16.msra.mxu1 %v2465_v7  ;;  %2173 = vmatprep.subr.bf16.mxu0 %v2466_v8 }
  0x67   :  { %2219 = vmatprep.subr.bf16.mxu1 %v2468_v10 }
  0x69   :  { %2174 = vmatpush3.bf16.msra.mxu0 %v2467_v9 }
  0x6a   :  { %2264 = vmatprep.subr.bf16.mxu0 %v2511_v15  ;;  %2220 = vmatpush3.bf16.msra.mxu1 %v2469_v11 }
  0x6b   :  { %1451 = vmatmul.mubr.bf16.gmra.mrb[36].mxu0 %v1861_v4  ;;  %2300 = vmatprep.subr.bf16.mxu1 %v2511_v15 }
  0x6c   :  { %1523 = vmatmul.mubr.bf16.gmra.mrb[36].mxu1 %v1863_v5  ;;  %1562 = vmatprep.mubr.bf16.mxu0 %v2472_v13 }
  0x6d   :  { %1634 = vmatprep.mubr.bf16.mxu1 %v2475_v16 }
  0x73   :  { %1563 = vmatmul.mubr.bf16.vlgmr.msra.gmra.mrb[40].mxu0 %v2470_v12 }
  0x74   :  { %1635 = vmatmul.mubr.bf16.vlgmr.msra.gmra.mrb[40].mxu1 %v2473_v14  ;;  %2265 = vmatpush3.bf16.msra.mxu0 %v2476_v17 }
  0x75   :  { %2308 = vmatpush3.bf16.msra.mxu1 %v2476_v17  ;;  %2266 = vmatprep.subr.bf16.mxu0 %v2511_v15 }
  0x76   :  { %1570 = vmatprep.mubr.bf16.mxu0 %v2478_v18  ;;  %1642 = vmatprep.mubr.bf16.mxu1 %v2480_v20 }
  0x77   :  { %2301 = vmatprep.subr.bf16.mxu1 %v2511_v15 }
  0x78   :  { %2267 = vmatpush3.bf16.msra.mxu0 %v2477_v19 }
  0x79   :  { %2309 = vmatpush3.bf16.msra.mxu1 %v2477_v19  ;;  %2268 = vmatprep.subr.bf16.mxu0 %v2511_v15 }
  0x7a   :  { %2302 = vmatprep.subr.bf16.mxu1 %v2511_v15 }
  0x7b   :  { %1571 = vmatmul.mubr.bf16.gmra.mrb[44].mxu0 %v2482_v21 }
  0x7c   :  { %1643 = vmatmul.mubr.bf16.gmra.mrb[44].mxu1 %v2483_v22  ;;  %2269 = vmatpush3.bf16.msra.mxu0 %v2484_v23 }
  0x7d   :  { %1578 = vmatprep.mubr.bf16.mxu0 %v2485_v24  ;;  %1650 = vmatprep.mubr.bf16.mxu1 %v2487_v25 }
  0x7e   :  { %2270 = vmatprep.subr.bf16.mxu0 %v2511_v15  ;;  %2310 = vmatpush3.bf16.msra.mxu1 %v2484_v23 }
  0x7f   :  { %2303 = vmatprep.subr.bf16.mxu1 %v2511_v15 }
  0x80   :  { %2271 = vmatpush3.bf16.msra.mxu0 %v2491_v26 }
  0x81   :  { %2272 = vmatprep.subr.bf16.mxu0 %v2511_v15 }
  0x82   :  { %2311 = vmatpush3.bf16.msra.mxu1 %v2491_v26 }
  0x83   :  { %1579 = vmatmul.mubr.bf16.gmra.mrb[48].mxu0 %v2489_v27  ;;  %2304 = vmatprep.subr.bf16.mxu1 %v2511_v15 }
  0x84   :  { %1651 = vmatmul.mubr.bf16.gmra.mrb[48].mxu1 %v2490_v28  ;;  %2273 = vmatpush3.bf16.msra.mxu0 %v2492_v29 }
  0x85   :  { %1586 = vmatprep.mubr.bf16.mxu0 %v2493_v30  ;;  %1658 = vmatprep.mubr.bf16.mxu1 %v2495_v31 }
  0x86   :  { %2312 = vmatpush3.bf16.msra.mxu1 %v2492_v29  ;;  %2274 = vmatprep.subr.bf16.mxu0 %v2511_v15 }
  0x87   :  { %2305 = vmatprep.subr.bf16.mxu1 %v2511_v15 }
  0x88   :  { %2275 = vmatpush3.bf16.msra.mxu0 %v2499_v32 }
  0x89   :  { %2276 = vmatprep.subr.bf16.mxu0 %v2511_v15 }
  0x8a   :  { %2313 = vmatpush3.bf16.msra.mxu1 %v2499_v32 }
  0x8b   :  { %1587 = vmatmul.mubr.bf16.gmra.mrb[52].mxu0 %v2497_v35  ;;  %2306 = vmatprep.subr.bf16.mxu1 %v2511_v15 }
  0x8c   :  { %1659 = vmatmul.mubr.bf16.gmra.mrb[52].mxu1 %v2498_v36  ;;  %1594 = vmatprep.mubr.bf16.mxu0 %v1866_v37 }
  0x8d   :  { %1666 = vmatprep.mubr.bf16.mxu1 %v1868_v38  ;;  %2277 = vmatpush3.bf16.msra.mxu0 %v2502_v39 }
  0x8e   :  { %2314 = vmatpush3.bf16.msra.mxu1 %v2502_v39  ;;  %2278 = vmatprep.subr.bf16.mxu0 %v2511_v15 }
  0x8f   :  { %2307 = vmatprep.subr.bf16.mxu1 %v2511_v15 }
  0x91   :  { %2279 = vmatpush3.bf16.msra.mxu0 %v2505_v40 }
  0x92   :  { %2315 = vmatpush3.bf16.msra.mxu1 %v2505_v40 }
  0x93   :  { %1595 = vmatmul.mubr.bf16.gmra.mrb[56].mxu0 %v1865_v41 }
  0x94   :  { %1667 = vmatmul.mubr.bf16.gmra.mrb[56].mxu1 %v1867_v42  ;;  %2280 = vmatprep.mubr.msk.bf16.mxu0 %vm2512_vm0, %v2511_v15 }
  0x95   :  { %2292 = vmatprep.mubr.msk.bf16.mxu1 %vm2512_vm0, %v2511_v15 }
  0x9b   :  { %2281 = vmatmul.mubr.bf16.vlgmr.msra.gmra.mrb[60].mxu0 %v2506_v43 }
  0x9c   :  { %2293 = vmatmul.mubr.bf16.vlgmr.msra.gmra.mrb[60].mxu1 %v2507_v44  ;;  %2284 = vmatprep.mubr.msk.bf16.mxu0 %vm2512_vm0, %v2511_v15 }
  0x9d   :  { %2296 = vmatprep.mubr.msk.bf16.mxu1 %vm2512_vm0, %v2511_v15 }
  0xa3   :  { %2285 = vmatmul.mubr.bf16.gmra.mrb[64].mxu0 %v2508_v45 }
  0xa4   :  { %2297 = vmatmul.mubr.bf16.gmra.mrb[64].mxu1 %v2509_v46  ;;  %2288 = vmatprep.mubr.msk.bf16.mxu0 %vm2512_vm0, %v2511_v15 }
  0xab   :  { %2289 = vmatmul.mubr.bf16.gmra.mrb[68].mxu0 %v2510_v47 }
  0xf6   :  { %v1991_v48 = vpop.f32.mrb[0].mxu0 }
  0xf7   :  { %v2037_v49 = vpop.f32.mrb[0].mxu1  ;;  %v1992_v50 = vpop.f32.mrb[1].mxu0 }
  0xf8   :  { %v1993_v51 = vadd.f32 %v1992_v50, %v1991_v48  ;;  %v2038_v52 = vpop.f32.mrb[1].mxu1  ;;  %v1994_v53 = vpop.f32.mrb[2].mxu0 }
  0xf9   :  { %v2039_v54 = vadd.f32 %v2038_v52, %v2037_v49  ;;  %v2040_v55 = vpop.f32.mrb[2].mxu1  ;;  %v1995_v56 = vpop.f32.mrb[3].mxu0 }
  0xfa   :  { %v1996_v57 = vadd.f32 %v1995_v56, %v1994_v53  ;;  %v2041_v58 = vpop.f32.mrb[3].mxu1 }
  0xfb   :  { %v3043_v59 = vadd.f32 %v2039_v54, %v1993_v51  ;;  %v2042_v60 = vadd.f32 %v2041_v58, %v2040_v55 }
  0xfd   :  { %v3045_v61 = vadd.f32 %v2042_v60, %v1996_v57 }
  0xfe   :  { %v1997_v62 = vpop.f32.mrb[4].mxu0 }
  0xff   :  { %v2043_v63 = vpop.f32.mrb[4].mxu1  ;;  %v1998_v0 = vpop.f32.mrb[5].mxu0 }
 0x100   :  { %v1999_v1 = vadd.f32 %v1998_v0, %v1997_v62  ;;  %v2044_v2 = vpop.f32.mrb[5].mxu1  ;;  %v2000_v3 = vpop.f32.mrb[6].mxu0 }
 0x101   :  { %v2045_v4 = vadd.f32 %v2044_v2, %v2043_v63  ;;  %v2046_v5 = vpop.f32.mrb[6].mxu1  ;;  %v2001_v6 = vpop.f32.mrb[7].mxu0 }
 0x102   :  { %v2002_v7 = vadd.f32 %v2001_v6, %v2000_v3  ;;  %v2047_v8 = vpop.f32.mrb[7].mxu1 }
 0x103   :  { %v3047_v9 = vadd.f32 %v2045_v4, %v1999_v1  ;;  %v2048_v10 = vadd.f32 %v2047_v8, %v2046_v5 }
 0x105   :  { %v3049_v11 = vadd.f32 %v2048_v10, %v2002_v7 }
 0x106   :  { %v2003_v12 = vpop.f32.mrb[8].mxu0 }
 0x107   :  { %v2049_v13 = vpop.f32.mrb[8].mxu1  ;;  %v2004_v14 = vpop.f32.mrb[9].mxu0 }
 0x108   :  { %v2005_v15 = vadd.f32 %v2004_v14, %v2003_v12  ;;  %v2050_v16 = vpop.f32.mrb[9].mxu1  ;;  %v2006_v17 = vpop.f32.mrb[10].mxu0 }
 0x109   :  { %v2051_v18 = vadd.f32 %v2050_v16, %v2049_v13  ;;  %v2052_v19 = vpop.f32.mrb[10].mxu1  ;;  %v2007_v20 = vpop.f32.mrb[11].mxu0 }
 0x10a   :  { %v2008_v21 = vadd.f32 %v2007_v20, %v2006_v17  ;;  %v2053_v22 = vpop.f32.mrb[11].mxu1 }
 0x10b   :  { %v3051_v23 = vadd.f32 %v2051_v18, %v2005_v15  ;;  %v2054_v24 = vadd.f32 %v2053_v22, %v2052_v19 }
 0x10d   :  { %v3053_v25 = vadd.f32 %v2054_v24, %v2008_v21 }
 0x10e   :  { %v2009_v26 = vpop.f32.mrb[12].mxu0 }
 0x10f   :  { %v2055_v27 = vpop.f32.mrb[12].mxu1  ;;  %v2010_v28 = vpop.f32.mrb[13].mxu0 }
 0x110   :  { %v2056_v29 = vpop.f32.mrb[13].mxu1  ;;  %v2011_v30 = vadd.f32 %v2010_v28, %v2009_v26  ;;  %v2012_v32 = vpop.f32.mrb[14].mxu0 }
 0x111   :  { %v2057_v31 = vadd.f32 %v2056_v29, %v2055_v27  ;;  %v2058_v33 = vpop.f32.mrb[14].mxu1  ;;  %v2013_v34 = vpop.f32.mrb[15].mxu0 }
 0x112   :  { %v2059_v35 = vpop.f32.mrb[15].mxu1  ;;  %v2014_v37 = vadd.f32 %v2013_v34, %v2012_v32 }
 0x113   :  { %v3055_v36 = vadd.f32 %v2057_v31, %v2011_v30  ;;  %v2060_v38 = vadd.f32 %v2059_v35, %v2058_v33 }
 0x115   :  { %v3057_v39 = vadd.f32 %v2060_v38, %v2014_v37 }
 0x116   :  { %v2015_v40 = vpop.f32.mrb[16].mxu0 }
 0x117   :  { %v2061_v41 = vpop.f32.mrb[16].mxu1  ;;  %v2016_v42 = vpop.f32.mrb[17].mxu0 }
 0x118   :  { %v2062_v43 = vpop.f32.mrb[17].mxu1  ;;  %v2017_v44 = vadd.f32 %v2016_v42, %v2015_v40  ;;  %v2018_v46 = vpop.f32.mrb[18].mxu0 }
 0x119   :  { %v2063_v45 = vadd.f32 %v2062_v43, %v2061_v41  ;;  %v2064_v47 = vpop.f32.mrb[18].mxu1  ;;  %v2019_v48 = vpop.f32.mrb[19].mxu0 }
 0x11a   :  { %v2065_v49 = vpop.f32.mrb[19].mxu1 }
 0x11b   :  { %v3059_v50 = vadd.f32 %v2063_v45, %v2017_v44 }
 0x11e   :  { %v2083_v51 = vpop.f32.mrb[20].mxu0 }
 0x11f   :  { %v2084_v52 = vpop.f32.mrb[21].mxu0  ;;  %v2129_v53 = vpop.f32.mrb[20].mxu1 }
 0x120   :  { %v2085_v54 = vadd.f32 %v2084_v52, %v2083_v51  ;;  %v2086_v55 = vpop.f32.mrb[22].mxu0  ;;  %v2130_v56 = vpop.f32.mrb[21].mxu1 }
 0x121   :  { %v2087_v57 = vpop.f32.mrb[23].mxu0  ;;  %v2131_v58 = vadd.f32 %v2130_v56, %v2129_v53  ;;  %v2132_v60 = vpop.f32.mrb[22].mxu1 }
 0x122   :  { %v1421_v62 = vadd.f32 %v2085_v54, %v3043_v59  ;;  %v2088_v63 = vadd.f32 %v2087_v57, %v2086_v55  ;;  %v2133_v0 = vpop.f32.mrb[23].mxu1 }
 0x123   :  { %v2134_v1 = vadd.f32 %v2133_v0, %v2132_v60 }
 0x124   :  { %v1424_v2 = vadd.f32 %v2088_v63, %v3045_v61  ;;  %v3063_v3 = vadd.f32 %v2131_v58, %v1421_v62 }
 0x126   :  { %v3065_v4 = vadd.f32 %v2134_v1, %v1424_v2  ;;  %v2089_v5 = vpop.f32.mrb[24].mxu0 }
 0x127   :  { %v2090_v6 = vpop.f32.mrb[25].mxu0  ;;  %v2135_v7 = vpop.f32.mrb[24].mxu1 }
 0x128   :  { %v2091_v8 = vadd.f32 %v2090_v6, %v2089_v5  ;;  %v2092_v10 = vpop.f32.mrb[26].mxu0  ;;  %v2136_v12 = vpop.f32.mrb[25].mxu1 }
 0x129   :  { %v2093_v13 = vpop.f32.mrb[27].mxu0  ;;  %v2137_v14 = vadd.f32 %v2136_v12, %v2135_v7  ;;  %v2138_v15 = vpop.f32.mrb[26].mxu1 }
 0x12a   :  { %v1429_v59 = vadd.f32 %v2091_v8, %v3047_v9  ;;  %v2094_v16 = vadd.f32 %v2093_v13, %v2092_v10  ;;  %v2139_v17 = vpop.f32.mrb[27].mxu1 }
 0x12b   :  { %v2140_v18 = vadd.f32 %v2139_v17, %v2138_v15 }
 0x12c   :  { %v1432_v61 = vadd.f32 %v2094_v16, %v3049_v11  ;;  %v3069_v19 = vadd.f32 %v2137_v14, %v1429_v59 }
 0x12e   :  { %v3071_v20 = vadd.f32 %v2140_v18, %v1432_v61  ;;  %v2095_v21 = vpop.f32.mrb[28].mxu0 }
 0x12f   :  { %v2096_v22 = vpop.f32.mrb[29].mxu0  ;;  %v2141_v24 = vpop.f32.mrb[28].mxu1 }
 0x130   :  { %v2097_v26 = vadd.f32 %v2096_v22, %v2095_v21  ;;  %v2098_v27 = vpop.f32.mrb[30].mxu0  ;;  %v2142_v28 = vpop.f32.mrb[29].mxu1 }
 0x131   :  { %v2099_v29 = vpop.f32.mrb[31].mxu0  ;;  %v2143_v30 = vadd.f32 %v2142_v28, %v2141_v24  ;;  %v2144_v31 = vpop.f32.mrb[30].mxu1 }
 0x132   :  { %v1437_v9 = vadd.f32 %v2097_v26, %v3051_v23  ;;  %v2100_v32 = vadd.f32 %v2099_v29, %v2098_v27  ;;  %v2145_v33 = vpop.f32.mrb[31].mxu1 }
 0x133   :  { %v2146_v34 = vadd.f32 %v2145_v33, %v2144_v31 }
 0x134   :  { %v1440_v11 = vadd.f32 %v2100_v32, %v3053_v25  ;;  %v3075_v35 = vadd.f32 %v2143_v30, %v1437_v9 }
 0x136   :  { %v3077_v37 = vadd.f32 %v2146_v34, %v1440_v11  ;;  %v2101_v38 = vpop.f32.mrb[32].mxu0 }
 0x137   :  { %v2102_v40 = vpop.f32.mrb[33].mxu0  ;;  %v2147_v41 = vpop.f32.mrb[32].mxu1 }
 0x138   :  { %v2103_v42 = vadd.f32 %v2102_v40, %v2101_v38  ;;  %v2104_v43 = vpop.f32.mrb[34].mxu0  ;;  %v2148_v44 = vpop.f32.mrb[33].mxu1 }
 0x139   :  { %v2105_v45 = vpop.f32.mrb[35].mxu0  ;;  %v2149_v46 = vadd.f32 %v2148_v44, %v2147_v41  ;;  %v2150_v47 = vpop.f32.mrb[34].mxu1 }
 0x13a   :  { %v1445_v23 = vadd.f32 %v2103_v42, %v3055_v36  ;;  %v2106_v48 = vadd.f32 %v2105_v45, %v2104_v43  ;;  %v2151_v49 = vpop.f32.mrb[35].mxu1 }
 0x13b   :  { %v2152_v51 = vadd.f32 %v2151_v49, %v2150_v47 }
 0x13c   :  { %v1448_v25 = vadd.f32 %v2106_v48, %v3057_v39  ;;  %v3081_v52 = vadd.f32 %v2149_v46, %v1445_v23 }
 0x13e   :  { %v3083_v53 = vadd.f32 %v2152_v51, %v1448_v25  ;;  %v2107_v55 = vpop.f32.mrb[36].mxu0 }
 0x13f   :  { %v2153_v54 = vpop.f32.mrb[36].mxu1  ;;  %v2108_v57 = vpop.f32.mrb[37].mxu0 }
 0x140   :  { %v2154_v56 = vpop.f32.mrb[37].mxu1  ;;  %v2109_v62 = vadd.f32 %v2108_v57, %v2107_v55  ;;  %v2110_v63 = vpop.f32.mrb[38].mxu0 }
 0x141   :  { %v2155_v58 = vadd.f32 %v2154_v56, %v2153_v54  ;;  %v2156_v60 = vpop.f32.mrb[38].mxu1  ;;  %v2111_v1 = vpop.f32.mrb[39].mxu0 }
 0x142   :  { %v2157_v0 = vpop.f32.mrb[39].mxu1  ;;  %v1453_v36 = vadd.f32 %v2109_v62, %v3059_v50 }
 0x144   :  { %v3086_v2 = vadd.f32 %v2155_v58, %v1453_v36 }
 0x146   :  { %v2175_v5 = vpop.f32.mrb[40].mxu0 }
 0x147   :  { %v2221_v39 = vpop.f32.mrb[40].mxu1  ;;  %v2176_v6 = vpop.f32.mrb[41].mxu0 }
 0x148   :  { %v2222_v7 = vpop.f32.mrb[41].mxu1  ;;  %v2177_v8 = vadd.f32 %v2176_v6, %v2175_v5  ;;  %v2178_v10 = vpop.f32.mrb[42].mxu0 }
 0x149   :  { %v2223_v12 = vadd.f32 %v2222_v7, %v2221_v39  ;;  %v2224_v13 = vpop.f32.mrb[42].mxu1  ;;  %v2179_v14 = vpop.f32.mrb[43].mxu0 }
 0x14a   :  { %v2225_v15 = vpop.f32.mrb[43].mxu1  ;;  %v1565_v59 = vadd.f32 %v2177_v8, %v3063_v3  ;;  %v2180_v16 = vadd.f32 %v2179_v14, %v2178_v10 }
 0x14b   :  { %v2226_v17 = vadd.f32 %v2225_v15, %v2224_v13 }
 0x14c   :  { %v1568_v18 = vadd.f32 %v2180_v16, %v3065_v4  ;;  %v3090_v61 = vadd.f32 %v2223_v12, %v1565_v59 }
 0x14e   :  { %v2181_v50 = vpop.f32.mrb[44].mxu0  ;;  %v3092_v22 = vadd.f32 %v2226_v17, %v1568_v18 }
 0x14f   :  { %v2227_v21 = vpop.f32.mrb[44].mxu1  ;;  %v2182_v24 = vpop.f32.mrb[45].mxu0 }
 0x150   :  { %v2228_v26 = vpop.f32.mrb[45].mxu1  ;;  %v2183_v27 = vadd.f32 %v2182_v24, %v2181_v50  ;;  %v2184_v28 = vpop.f32.mrb[46].mxu0 }
 0x151   :  { %v2229_v29 = vadd.f32 %v2228_v26, %v2227_v21  ;;  %v2230_v30 = vpop.f32.mrb[46].mxu1  ;;  %v2185_v31 = vpop.f32.mrb[47].mxu0 }
 0x152   :  { %v2231_v9 = vpop.f32.mrb[47].mxu1  ;;  %v1573_v3 = vadd.f32 %v2183_v27, %v3069_v19  ;;  %v2186_v32 = vadd.f32 %v2185_v31, %v2184_v28  ;;  %v1974_v28 = vld [vmem:[%s3147_s2] ss:$0 sm:$0xff] }
 0x153   :  { %v2232_v33 = vadd.f32 %v2231_v9, %v2230_v30 }
 0x154   :  { %v1576_v4 = vadd.f32 %v2186_v32, %v3071_v20  ;;  %v3096_v34 = vadd.f32 %v2229_v29, %v1573_v3 }
 0x156   :  { %v2187_v11 = vpop.f32.mrb[48].mxu0  ;;  %v3098_v40 = vadd.f32 %v2232_v33, %v1576_v4 }
 0x157   :  { %v2233_v38 = vpop.f32.mrb[48].mxu1  ;;  %v2188_v41 = vpop.f32.mrb[49].mxu0 }
 0x158   :  { %v2234_v42 = vpop.f32.mrb[49].mxu1  ;;  %v2189_v43 = vadd.f32 %v2188_v41, %v2187_v11  ;;  %v2190_v44 = vpop.f32.mrb[50].mxu0 }
 0x159   :  { %v2235_v45 = vadd.f32 %v2234_v42, %v2233_v38  ;;  %v2236_v46 = vpop.f32.mrb[50].mxu1  ;;  %v2191_v47 = vpop.f32.mrb[51].mxu0 }
 0x15a   :  { %v2237_v23 = vpop.f32.mrb[51].mxu1  ;;  %v1581_v19 = vadd.f32 %v2189_v43, %v3075_v35  ;;  %v2192_v48 = vadd.f32 %v2191_v47, %v2190_v44 }
 0x15b   :  { %v2238_v49 = vadd.f32 %v2237_v23, %v2236_v46 }
 0x15c   :  { %v1584_v20 = vadd.f32 %v2192_v48, %v3077_v37  ;;  %v3102_v51 = vadd.f32 %v2235_v45, %v1581_v19 }
 0x15e   :  { %v2193_v25 = vpop.f32.mrb[52].mxu0  ;;  %v3104_v55 = vadd.f32 %v2238_v49, %v1584_v20 }
 0x15f   :  { %v2239_v54 = vpop.f32.mrb[52].mxu1  ;;  %v2194_v56 = vpop.f32.mrb[53].mxu0 }
 0x160   :  { %v2240_v57 = vpop.f32.mrb[53].mxu1  ;;  %v2195_v58 = vadd.f32 %v2194_v56, %v2193_v25  ;;  %v2196_v60 = vpop.f32.mrb[54].mxu0 }
 0x161   :  { %v2241_v62 = vadd.f32 %v2240_v57, %v2239_v54  ;;  %v2242_v63 = vpop.f32.mrb[54].mxu1  ;;  %v2197_v0 = vpop.f32.mrb[55].mxu0 }
 0x162   :  { %v2243_v1 = vpop.f32.mrb[55].mxu1  ;;  %v1589_v35 = vadd.f32 %v2195_v58, %v3081_v52  ;;  %v2198_v36 = vadd.f32 %v2197_v0, %v2196_v60 }
 0x163   :  { %v2244_v5 = vadd.f32 %v2243_v1, %v2242_v63 }
 0x164   :  { %v1592_v37 = vadd.f32 %v2198_v36, %v3083_v53  ;;  %v1661_v39 = vadd.f32 %v2241_v62, %v1589_v35 }
 0x166   :  { %v2199_v6 = vpop.f32.mrb[56].mxu0  ;;  %v1664_v8 = vadd.f32 %v2244_v5, %v1592_v37 }
 0x167   :  { %v2245_v7 = vpop.f32.mrb[56].mxu1  ;;  %v2200_v10 = vpop.f32.mrb[57].mxu0 }
 0x168   :  { %v2246_v12 = vpop.f32.mrb[57].mxu1  ;;  %v2201_v13 = vadd.f32 %v2200_v10, %v2199_v6  ;;  %v2202_v14 = vpop.f32.mrb[58].mxu0 }
 0x169   :  { %v2247_v15 = vadd.f32 %v2246_v12, %v2245_v7  ;;  %v2248_v59 = vpop.f32.mrb[58].mxu1  ;;  %v2203_v16 = vpop.f32.mrb[59].mxu0 }
 0x16a   :  { %v2249_v17 = vpop.f32.mrb[59].mxu1  ;;  %v1597_v18 = vadd.f32 %v2201_v13, %v3086_v2 }
 0x16c   :  { %v1669_v50 = vadd.f32 %v2247_v15, %v1597_v18 }
 0x16e   :  { %v1708_v52 = vpop.f32.mrb[60].mxu0 }
 0x16f   :  { %v1732_v21 = vpop.f32.mrb[60].mxu1  ;;  %v1709_v24 = vadd.f32 %v1708_v52, %v3090_v61  ;;  %v2282_v26 = vpop.f32.mrb[61].mxu0 }
 0x170   :  { %v1733_v53 = vadd.f32 %v1732_v21, %v1661_v39  ;;  %v2294_v27 = vpop.f32.mrb[61].mxu1  ;;  %v1711_v29 = vpop.f32.mrb[62].mxu0 }
 0x171   :  { %v1735_v30 = vpop.f32.mrb[62].mxu1  ;;  %v1712_v31 = vadd.f32 %v1711_v29, %v3092_v22  ;;  %v2283_v3 = vpop.f32.mrb[63].mxu0  ;;  %v1783_v2 = vadd.f32 %v1974_v28, %v1709_v24 }
 0x172   :  { %v1736_v9 = vadd.f32 %v1735_v30, %v1664_v8  ;;  %v2295_v32 = vpop.f32.mrb[63].mxu1  ;;  %v1789_v33 = vadd.f32 %v1974_v28, %v1733_v53 }
 0x173   :  { %1792 = vst [vmem:[%s3148_s3] sm:$0xff] %v1783_v2  ;;  %v1784_v61 = vadd.f32 %v1974_v28, %v1712_v31 }
 0x174   :  { %1798 = vst [vmem:[%s3148_s3 + $0x30] sm:$0xff] %v1789_v33  ;;  %v1790_v4 = vadd.f32 %v1974_v28, %v1736_v9 }
 0x175   :  { %1793 = vst [vmem:[%s3148_s3 + $0x8] sm:$0xff] %v1784_v61 }
 0x176   :  { %v1716_v11 = vpop.f32.mrb[64].mxu0  ;;  %1799 = vst [vmem:[%s3148_s3 + $0x38] sm:$0xff] %v1790_v4 }
 0x177   :  { %v1740_v38 = vpop.f32.mrb[64].mxu1  ;;  %v1717_v22 = vadd.f32 %v1716_v11, %v3096_v34  ;;  %v2286_v42 = vpop.f32.mrb[65].mxu0 }
 0x178   :  { %v1741_v41 = vadd.f32 %v1740_v38, %v1669_v50  ;;  %v2298_v43 = vpop.f32.mrb[65].mxu1  ;;  %v1719_v44 = vpop.f32.mrb[66].mxu0 }
 0x179   :  { %v1743_v45 = vpop.f32.mrb[66].mxu1  ;;  %v1720_v46 = vadd.f32 %v1719_v44, %v3098_v40  ;;  %v2287_v47 = vpop.f32.mrb[67].mxu0  ;;  %v1785_v19 = vadd.f32 %v1974_v28, %v1717_v22 }
 0x17a   :  { %v2299_v23 = vpop.f32.mrb[67].mxu1  ;;  %v1791_v48 = vadd.f32 %v1974_v28, %v1741_v41 }
 0x17b   :  { %1794 = vst [vmem:[%s3148_s3 + $0x10] sm:$0xff] %v1785_v19  ;;  %v1786_v34 = vadd.f32 %v1974_v28, %v1720_v46 }
 0x17c   :  { %1800 = vst [vmem:[%s3148_s3 + $0x40] sm:$0xff] %v1791_v48 }
 0x17d   :  { %1795 = vst [vmem:[%s3148_s3 + $0x18] sm:$0xff] %v1786_v34 }
 0x17e   :  { %v1724_v49 = vpop.f32.mrb[68].mxu0 }
 0x17f   :  { %v1725_v40 = vadd.f32 %v1724_v49, %v3102_v51  ;;  %v2290_v20 = vpop.f32.mrb[69].mxu0 }
 0x180   :  { %v1727_v25 = vpop.f32.mrb[70].mxu0 }
 0x181   :  { %v1728_v54 = vadd.f32 %v1727_v25, %v3104_v55  ;;  %v2291_v56 = vpop.f32.mrb[71].mxu0  ;;  %v1787_v57 = vadd.f32 %v1974_v28, %v1725_v40 }
 0x183   :  { %1796 = vst [vmem:[%s3148_s3 + $0x20] sm:$0xff] %v1787_v57  ;;  %v1788_v58 = vadd.f32 %v1974_v28, %v1728_v54 }
 0x185   :  { %1797 = vst [vmem:[%s3148_s3 + $0x28] sm:$0xff] %v1788_v58 }

</bundles_post_ra>
